<compile_context>
chip_gen: v5e
topology: v5e:2x2
jax: 0.10.0
libtpu: 0.0.40
codegen_flags: <defaults>
</compile_context>

<pallas_src>
import functools

import jax
import jax.numpy as jnp
from jax import lax
from jax.experimental import pallas as pl
from jax.experimental.pallas import tpu as pltpu

_LANE = 128


# ------------------------------- fused kernel --------------------------------

def _fused_forward_kernel(idx_ref,                                   # SMEM (1,) int32
                          x_ref,
                          w1e_ref, b1e_ref, w2e_ref, b2e_ref, w3e_ref, b3e_ref,
                          w1d_ref, b1d_ref, w2d_ref, b2d_ref, w3d_ref, b3d_ref,
                          y_ref,
                          enc_ref, dec_ref, wgt_ref, beta_ref,
                          *, latent, sigma, k, lambda_reg):
    f32 = jnp.float32
    n, lpad = enc_ref.shape

    def linear(h, w_r, b_r):
        # MXU matmul, f32 throughout (see perf notes at top of file).
        return jnp.dot(h, w_r[...], preferred_element_type=f32) + b_r[...]

    # ------------- encoder: Linear-Tanh-(Dropout=id) x2 -> Linear ------------
    h = jnp.tanh(linear(x_ref[...], w1e_ref, b1e_ref))
    h = jnp.tanh(linear(h, w2e_ref, b2e_ref))
    z = linear(h, w3e_ref, b3e_ref)                  # (N, LPAD); lanes >= latent are 0
    enc_ref[...] = z

    # ----------- single-site gaussian weights with k-nearest masking ---------
    zc = enc_ref[pl.ds(idx_ref[0], 1), :]            # (1, LPAD) centre row, idx from SMEM
    diff = z - zc
    sq = diff * diff                                 # (N, LPAD) f32
    d2 = jnp.sum(sq, axis=1, keepdims=True)          # (N, 1)  XLU lane reduce (no MXU)
    ones_row = jnp.ones((1, lpad), f32)
    lane_dims = (((1,), (1,)), ((), ()))
    d2_row = lax.dot_general(ones_row, sq, lane_dims,
                             preferred_element_type=f32)            # (1, N): d2_j
    row_i = lax.broadcasted_iota(jnp.int32, (n, n), 0)
    col_j = lax.broadcasted_iota(jnp.int32, (n, n), 1)
    closer = jnp.logical_and(d2_row < d2, row_i != col_j)           # d2_j < d2_i, j != i
    rank = jnp.sum(closer.astype(f32), axis=1, keepdims=True)       # (N, 1)
    keep = (rank < float(k)).astype(f32)
    w = jnp.exp(d2 * (-1.0 / (2.0 * sigma * sigma))) * keep         # (N, 1)
    wgt_ref[...] = jnp.broadcast_to(w, (n, lpad))    # lane-dense store; column 0 = answer

    # --------------- weighted ridge regression normal equations --------------
    # Safe: k >= 1 guarantees the centre sample keeps weight exp(0) = 1, so sum(w) > 0.
    w_std = w / jnp.sum(w)
    sub_dims = (((0,), (0,)), ((), ()))
    gram = lax.dot_general(z, w_std * z, sub_dims,
                           preferred_element_type=f32)              # (LPAD, LPAD)
    rr = lax.broadcasted_iota(jnp.int32, (latent, lpad), 0)
    cc = lax.broadcasted_iota(jnp.int32, (latent, lpad), 1)
    a = gram[:latent, :] + lambda_reg * (rr == cc).astype(f32)      # (latent, LPAD)
    b = lax.dot_general(w_std * y_ref[...], z, sub_dims,
                        preferred_element_type=f32)                 # (1, LPAD) = (Z^T W y)^T

    # In-kernel solve: unrolled column Gauss-Jordan.  Column ops reduce the
    # (latent, latent) block of `a` to the identity; the same ops applied to `b`
    # leave beta^T = b^T A^{-1} in the first `latent` lanes of `b` (A symmetric).
    # Padded lanes (>= latent) of `a`/`b` are zero and stay zero.
    for kk in range(latent):
        rowk = a[kk:kk + 1, :]                        # (1, LPAD)
        pivot = rowk[:, kk:kk + 1]                    # (1, 1), > 0 (SPD + lambda*I)
        inv_p = 1.0 / pivot
        coef = rowk * inv_p                           # (1, LPAD)
        colk_a = a[:, kk:kk + 1]                      # (latent, 1)
        colk_b = b[:, kk:kk + 1]                      # (1, 1)
        lane_is_k = lax.broadcasted_iota(jnp.int32, (1, lpad), 1) == kk
        a = jnp.where(lane_is_k, colk_a * inv_p, a - colk_a * coef)
        b = jnp.where(lane_is_k, colk_b * inv_p, b - colk_b * coef)
    beta_ref[...] = b                                 # (1, LPAD), beta in lanes [:latent]

    # ------------- decoder: Linear-Tanh-(Dropout=id) x2 -> Linear ------------
    h = jnp.tanh(linear(z, w1d_ref, b1d_ref))
    h = jnp.tanh(linear(h, w2d_ref, b2d_ref))
    dec_ref[...] = linear(h, w3d_ref, b3d_ref)


# -------------------------- host-side packing (once) --------------------------

def _pad2(a, rows, cols):
    a = jnp.asarray(a, jnp.float32)
    return jnp.pad(a, ((0, rows - a.shape[0]), (0, cols - a.shape[1])))


def pack_autoencoder_params(enc_params, dec_params):
    """Zero-pad all Linear weights/biases to lane-dense 128-wide buffers.

    Call ONCE per parameter set (outside the per-call path); the result is reused
    by every forward call, so the dozen pad ops no longer run inside the jit.
    """
    dims = [enc_params[0].shape[0]]
    for wmat in list(enc_params[::2]) + list(dec_params[::2]):
        dims.append(wmat.shape[1])
    lpad = _LANE * pl.cdiv(max(dims), _LANE)
    packed = []
    for params in (enc_params, dec_params):
        for wmat, bias in zip(params[::2], params[1::2]):
            packed.append(_pad2(wmat, lpad, lpad))                       # (in, out)
            packed.append(_pad2(jnp.reshape(bias, (1, -1)), 1, lpad))    # (1, out)
    return tuple(packed)


# ---------------------------------- wrapper -----------------------------------

@functools.partial(jax.jit,
                   static_argnames=("latent_size", "sigma", "k_nearest",
                                    "kernel", "lambda_reg"))
def autoencoder_with_regression_forward(packed_params, x_data, y_data, idx, *,
                                        latent_size, sigma, k_nearest, kernel,
                                        lambda_reg=0.5):
    # TODO(synk): original weights.ss_torch_weights / loregs.* sources are not
    # available; gaussian kernel with k-nearest masking (k = round(k_nearest*N))
    # and weighted ridge with lambda_reg are implemented as the reference guess.
    if kernel != "gaussian":
        raise NotImplementedError("only the gaussian kernel is implemented")

    n, input_size = x_data.shape
    lpad = packed_params[0].shape[0]
    k = max(1, int(round(k_nearest * n)))

    x_pad = _pad2(x_data, n, lpad)
    y_col = jnp.reshape(y_data, (n, 1)).astype(jnp.float32)     # y_data.squeeze(0) as column
    idx_arr = jnp.asarray(idx, jnp.int32).reshape((1,))

    whole = lambda i, idx_ref: (0, 0)                # trivial grid, whole-array blocks
    grid_spec = pltpu.PrefetchScalarGridSpec(
        num_scalar_prefetch=1,
        grid=(1,),
        in_specs=([pl.BlockSpec((n, lpad), whole)]
                  + [pl.BlockSpec(p.shape, whole) for p in packed_params]
                  + [pl.BlockSpec((n, 1), whole)]),
        out_specs=[pl.BlockSpec((n, lpad), whole),       # encoded (padded)
                   pl.BlockSpec((n, lpad), whole),       # decoded (padded)
                   pl.BlockSpec((n, lpad), whole),       # weights (lane-broadcast)
                   pl.BlockSpec((1, lpad), whole)],      # beta row (lane-dense)
    )
    out_shape = (jax.ShapeDtypeStruct((n, lpad), jnp.float32),
                 jax.ShapeDtypeStruct((n, lpad), jnp.float32),
                 jax.ShapeDtypeStruct((n, lpad), jnp.float32),
                 jax.ShapeDtypeStruct((1, lpad), jnp.float32))

    enc_pad, dec_pad, wgt_pad, beta_row = pl.pallas_call(
        functools.partial(_fused_forward_kernel, latent=latent_size,
                          sigma=float(sigma), k=k, lambda_reg=float(lambda_reg)),
        grid_spec=grid_spec,
        out_shape=out_shape,
        compiler_params=pltpu.CompilerParams(
            dimension_semantics=("arbitrary",),
            vmem_limit_bytes=32 * 1024 * 1024),
    )(idx_arr, x_pad, *packed_params, y_col)

    encoded_all = enc_pad[:, :latent_size]
    decoded_all = dec_pad[:, :input_size]
    beta = beta_row[0, :latent_size]
    weights_all = wgt_pad[:, 0]
    return encoded_all, decoded_all, beta, weights_all


# ------------------------------- init helpers ---------------------------------

def _xavier_uniform(key, fan_in, fan_out):
    bound = (6.0 / (fan_in + fan_out)) ** 0.5
    return jax.random.uniform(key, (fan_in, fan_out), jnp.float32, -bound, bound)


def _make_params(key, dims):
    params = []
    keys = jax.random.split(key, len(dims) - 1)
    for kk, (din, dout) in zip(keys, zip(dims[:-1], dims[1:])):
        params.append(_xavier_uniform(kk, din, dout))    # weight stored as (in, out)
        params.append(jnp.zeros((1, dout), jnp.float32)) # bias -> zeros
    return tuple(params)


# ----------------------------- pure-JAX reference ------------------------------

def _reference_forward(enc_params, dec_params, x, y, idx, sigma, k_nearest,
                       lambda_reg=0.5):
    with jax.default_matmul_precision("float32"):
        def mlp(h, params):
            w1, b1, w2, b2, w3, b3 = params
            h = jnp.tanh(h @ w1 + b1)
            h = jnp.tanh(h @ w2 + b2)
            return h @ w3 + b3

        n = x.shape[0]
        k = max(1, int(round(k_nearest * n)))
        z = mlp(x, enc_params)
        d2 = jnp.sum((z - z[idx]) ** 2, axis=1)
        neq = jnp.arange(n)[:, None] != jnp.arange(n)[None, :]
        rank = jnp.sum((d2[None, :] < d2[:, None]) & neq, axis=1)
        wts = jnp.exp(-d2 / (2.0 * sigma * sigma)) * (rank < k)
        w_std = wts / jnp.sum(wts)
        a_mat = z.T @ (w_std[:, None] * z) + lambda_reg * jnp.eye(z.shape[1])
        b_vec = z.T @ (w_std * y)
        beta = jnp.linalg.solve(a_mat, b_vec)
        return z, mlp(z, dec_params), beta, wts


# ----------------------------------- driver ------------------------------------

if __name__ == "__main__":
    input_size, hidden_1, hidden_2, latent = 16, 32, 16, 8
    n_samples = 8

    root = jax.random.PRNGKey(0)
    k_enc, k_dec, k_x, k_y = jax.random.split(root, 4)
    enc_params = _make_params(k_enc, (input_size, hidden_1, hidden_2, latent))
    dec_params = _make_params(k_dec, (latent, hidden_2, hidden_1, input_size))

    x_data = jax.random.normal(k_x, (n_samples, input_size), jnp.float32)
    y_data = jax.random.normal(k_y, (1, n_samples), jnp.float32)

    # Pack / pad weights ONCE (outside the per-call path).
    packed_params = pack_autoencoder_params(enc_params, dec_params)

    encoded, decoded, beta, weights = autoencoder_with_regression_forward(
        packed_params, x_data, y_data, 3,
        latent_size=latent, sigma=1.0, k_nearest=0.5, kernel="gaussian")
    jax.block_until_ready((encoded, decoded, beta, weights))

    assert encoded.shape == (n_samples, latent)
    assert decoded.shape == (n_samples, input_size)
    assert beta.shape == (latent,)
    assert weights.shape == (n_samples,)

    enc_r, dec_r, beta_r, wts_r = _reference_forward(
        enc_params, dec_params, x_data, y_data[0], 3, 1.0, 0.5)
    assert jnp.allclose(encoded, enc_r, atol=1e-3, rtol=1e-2)
    assert jnp.allclose(decoded, dec_r, atol=1e-3, rtol=1e-2)
    assert jnp.allclose(weights, wts_r, atol=1e-3, rtol=1e-2)
    assert jnp.allclose(beta, beta_r, atol=2e-3, rtol=2e-2)

    print("KERNEL_OK")
</pallas_src>

<mosaic_0001>
module attributes {stable_mosaic.version = 11 : i64} {
  func.func @_fused_forward_kernel(%arg0: i32, %arg1: memref<1xi32, #tpu.memory_space<smem>>, %arg2: memref<8x128xf32, #tpu.memory_space<vmem>>, %arg3: memref<128x128xf32, #tpu.memory_space<vmem>>, %arg4: memref<1x128xf32, #tpu.memory_space<vmem>>, %arg5: memref<128x128xf32, #tpu.memory_space<vmem>>, %arg6: memref<1x128xf32, #tpu.memory_space<vmem>>, %arg7: memref<128x128xf32, #tpu.memory_space<vmem>>, %arg8: memref<1x128xf32, #tpu.memory_space<vmem>>, %arg9: memref<128x128xf32, #tpu.memory_space<vmem>>, %arg10: memref<1x128xf32, #tpu.memory_space<vmem>>, %arg11: memref<128x128xf32, #tpu.memory_space<vmem>>, %arg12: memref<1x128xf32, #tpu.memory_space<vmem>>, %arg13: memref<128x128xf32, #tpu.memory_space<vmem>>, %arg14: memref<1x128xf32, #tpu.memory_space<vmem>>, %arg15: memref<8x1xf32, #tpu.memory_space<vmem>>, %arg16: memref<8x128xf32, #tpu.memory_space<vmem>>, %arg17: memref<8x128xf32, #tpu.memory_space<vmem>>, %arg18: memref<8x128xf32, #tpu.memory_space<vmem>>, %arg19: memref<1x128xf32, #tpu.memory_space<vmem>>) attributes {dimension_semantics = [#tpu.dimension_semantics<arbitrary>], iteration_bounds = array<i64: 1>, scalar_prefetch = 1 : i64, scratch_operands = 0 : i64, tpu.core_type = #tpu.core_type<tc>, window_params = [{pipeline_mode = #tpu.pipeline_mode<synchronous>, transform_indices = @transform_0, window_bounds = array<i64: 8, 128>}, {pipeline_mode = #tpu.pipeline_mode<synchronous>, transform_indices = @transform_1, window_bounds = array<i64: 128, 128>}, {pipeline_mode = #tpu.pipeline_mode<synchronous>, transform_indices = @transform_2, window_bounds = array<i64: 1, 128>}, {pipeline_mode = #tpu.pipeline_mode<synchronous>, transform_indices = @transform_3, window_bounds = array<i64: 128, 128>}, {pipeline_mode = #tpu.pipeline_mode<synchronous>, transform_indices = @transform_4, window_bounds = array<i64: 1, 128>}, {pipeline_mode = #tpu.pipeline_mode<synchronous>, transform_indices = @transform_5, window_bounds = array<i64: 128, 128>}, {pipeline_mode = #tpu.pipeline_mode<synchronous>, transform_indices = @transform_6, window_bounds = array<i64: 1, 128>}, {pipeline_mode = #tpu.pipeline_mode<synchronous>, transform_indices = @transform_7, window_bounds = array<i64: 128, 128>}, {pipeline_mode = #tpu.pipeline_mode<synchronous>, transform_indices = @transform_8, window_bounds = array<i64: 1, 128>}, {pipeline_mode = #tpu.pipeline_mode<synchronous>, transform_indices = @transform_9, window_bounds = array<i64: 128, 128>}, {pipeline_mode = #tpu.pipeline_mode<synchronous>, transform_indices = @transform_10, window_bounds = array<i64: 1, 128>}, {pipeline_mode = #tpu.pipeline_mode<synchronous>, transform_indices = @transform_11, window_bounds = array<i64: 128, 128>}, {pipeline_mode = #tpu.pipeline_mode<synchronous>, transform_indices = @transform_12, window_bounds = array<i64: 1, 128>}, {pipeline_mode = #tpu.pipeline_mode<synchronous>, transform_indices = @transform_13, window_bounds = array<i64: 8, 1>}, {pipeline_mode = #tpu.pipeline_mode<synchronous>, transform_indices = @transform_14, window_bounds = array<i64: 8, 128>}, {pipeline_mode = #tpu.pipeline_mode<synchronous>, transform_indices = @transform_15, window_bounds = array<i64: 8, 128>}, {pipeline_mode = #tpu.pipeline_mode<synchronous>, transform_indices = @transform_16, window_bounds = array<i64: 8, 128>}, {pipeline_mode = #tpu.pipeline_mode<synchronous>, transform_indices = @transform_17, window_bounds = array<i64: 1, 128>}]} {
    %c0 = arith.constant 0 : index
    %c0_0 = arith.constant 0 : index
    %0 = vector.load %arg2[%c0, %c0_0] : memref<8x128xf32, #tpu.memory_space<vmem>>, vector<8x128xf32>
    %c0_1 = arith.constant 0 : index
    %c0_2 = arith.constant 0 : index
    %1 = vector.load %arg3[%c0_1, %c0_2] : memref<128x128xf32, #tpu.memory_space<vmem>>, vector<128x128xf32>
    %cst = arith.constant dense<0.000000e+00> : vector<8x128xf32>
    %2 = tpu.matmul %0, %1, %cst {dimension_numbers = #tpu.dot_dimension_numbers<[1], [0], [0], [1], [0, 0, 1, 1], [], []>} : vector<8x128xf32>, vector<128x128xf32>, vector<8x128xf32> -> vector<8x128xf32>
    %c0_3 = arith.constant 0 : index
    %c0_4 = arith.constant 0 : index
    %3 = vector.load %arg4[%c0_3, %c0_4] : memref<1x128xf32, #tpu.memory_space<vmem>>, vector<1x128xf32>
    %4 = vector.broadcast %3 : vector<1x128xf32> to vector<8x128xf32>
    %5 = arith.addf %2, %4 : vector<8x128xf32>
    %6 = math.tanh %5 : vector<8x128xf32>
    %c0_5 = arith.constant 0 : index
    %c0_6 = arith.constant 0 : index
    %7 = vector.load %arg5[%c0_5, %c0_6] : memref<128x128xf32, #tpu.memory_space<vmem>>, vector<128x128xf32>
    %cst_7 = arith.constant dense<0.000000e+00> : vector<8x128xf32>
    %8 = tpu.matmul %6, %7, %cst_7 {dimension_numbers = #tpu.dot_dimension_numbers<[1], [0], [0], [1], [0, 0, 1, 1], [], []>} : vector<8x128xf32>, vector<128x128xf32>, vector<8x128xf32> -> vector<8x128xf32>
    %c0_8 = arith.constant 0 : index
    %c0_9 = arith.constant 0 : index
    %9 = vector.load %arg6[%c0_8, %c0_9] : memref<1x128xf32, #tpu.memory_space<vmem>>, vector<1x128xf32>
    %10 = vector.broadcast %9 : vector<1x128xf32> to vector<8x128xf32>
    %11 = arith.addf %8, %10 : vector<8x128xf32>
    %12 = math.tanh %11 : vector<8x128xf32>
    %c0_10 = arith.constant 0 : index
    %c0_11 = arith.constant 0 : index
    %13 = vector.load %arg7[%c0_10, %c0_11] : memref<128x128xf32, #tpu.memory_space<vmem>>, vector<128x128xf32>
    %cst_12 = arith.constant dense<0.000000e+00> : vector<8x128xf32>
    %14 = tpu.matmul %12, %13, %cst_12 {dimension_numbers = #tpu.dot_dimension_numbers<[1], [0], [0], [1], [0, 0, 1, 1], [], []>} : vector<8x128xf32>, vector<128x128xf32>, vector<8x128xf32> -> vector<8x128xf32>
    %c0_13 = arith.constant 0 : index
    %c0_14 = arith.constant 0 : index
    %15 = vector.load %arg8[%c0_13, %c0_14] : memref<1x128xf32, #tpu.memory_space<vmem>>, vector<1x128xf32>
    %16 = vector.broadcast %15 : vector<1x128xf32> to vector<8x128xf32>
    %17 = arith.addf %14, %16 : vector<8x128xf32>
    %c0_15 = arith.constant 0 : index
    %c0_16 = arith.constant 0 : index
    %18 = vector.load %arg16[%c0_15, %c0_16] : memref<8x128xf32, #tpu.memory_space<vmem>>, vector<8x128xf32>
    tpu.vector_store %arg16[%c0_15, %c0_16], %17 {strides = array<i32>} : memref<8x128xf32, #tpu.memory_space<vmem>>, vector<8x128xf32>,
    %c0_17 = arith.constant 0 : index
    %19 = memref.load %arg1[%c0_17] : memref<1xi32, #tpu.memory_space<smem>>
    %20 = arith.index_cast %19 : i32 to index
    %c0_18 = arith.constant 0 : index
    %21 = vector.load %arg16[%20, %c0_18] : memref<8x128xf32, #tpu.memory_space<vmem>>, vector<1x128xf32>
    %22 = vector.broadcast %21 : vector<1x128xf32> to vector<8x128xf32>
    %23 = arith.subf %17, %22 : vector<8x128xf32>
    %24 = arith.mulf %23, %23 : vector<8x128xf32>
    %cst_19 = arith.constant dense<0.000000e+00> : vector<8xf32>
    %25 = vector.multi_reduction <add>, %24, %cst_19 [1] : vector<8x128xf32> to vector<8xf32>
    %26 = vector.shape_cast %25 : vector<8xf32> to vector<8x1xf32>
    %cst_20 = arith.constant 1.000000e+00 : f32
    %27 = vector.broadcast %cst_20 : f32 to vector<1x128xf32>
    %cst_21 = arith.constant dense<0.000000e+00> : vector<1x8xf32>
    %28 = tpu.matmul %27, %24, %cst_21 {dimension_numbers = #tpu.dot_dimension_numbers<[1], [1], [0], [0], [0, 0, 1, 0], [], []>} : vector<1x128xf32>, vector<8x128xf32>, vector<1x8xf32> -> vector<1x8xf32>
    %29 = tpu.iota {dimensions = array<i32: 0>} : vector<8x8xi32>
    %30 = tpu.iota {dimensions = array<i32: 1>} : vector<8x8xi32>
    %31 = vector.broadcast %28 : vector<1x8xf32> to vector<8x8xf32>
    %32 = vector.broadcast %26 : vector<8x1xf32> to vector<8x8xf32>
    %33 = arith.cmpf olt, %31, %32 : vector<8x8xf32>
    %34 = arith.cmpi ne, %29, %30 : vector<8x8xi32>
    %35 = arith.andi %33, %34 : vector<8x8xi1>
    %36 = arith.extui %35 : vector<8x8xi1> to vector<8x8xi32>
    %37 = arith.sitofp %36 : vector<8x8xi32> to vector<8x8xf32>
    %cst_22 = arith.constant dense<0.000000e+00> : vector<8xf32>
    %38 = vector.multi_reduction <add>, %37, %cst_22 [1] : vector<8x8xf32> to vector<8xf32>
    %39 = vector.shape_cast %38 : vector<8xf32> to vector<8x1xf32>
    %cst_23 = arith.constant 4.000000e+00 : f32
    %40 = vector.broadcast %cst_23 : f32 to vector<8x1xf32>
    %41 = arith.cmpf olt, %39, %40 : vector<8x1xf32>
    %42 = arith.extui %41 : vector<8x1xi1> to vector<8x1xi32>
    %43 = arith.sitofp %42 : vector<8x1xi32> to vector<8x1xf32>
    %cst_24 = arith.constant -5.000000e-01 : f32
    %44 = vector.broadcast %cst_24 : f32 to vector<8x1xf32>
    %45 = arith.mulf %26, %44 : vector<8x1xf32>
    %46 = math.exp %45 : vector<8x1xf32>
    %47 = arith.mulf %46, %43 : vector<8x1xf32>
    %48 = vector.shape_cast %47 : vector<8x1xf32> to vector<8x1xf32>
    %49 = vector.broadcast %48 : vector<8x1xf32> to vector<8x128xf32>
    %c0_25 = arith.constant 0 : index
    %c0_26 = arith.constant 0 : index
    %50 = vector.load %arg18[%c0_25, %c0_26] : memref<8x128xf32, #tpu.memory_space<vmem>>, vector<8x128xf32>
    tpu.vector_store %arg18[%c0_25, %c0_26], %49 {strides = array<i32>} : memref<8x128xf32, #tpu.memory_space<vmem>>, vector<8x128xf32>,
    %51 = vector.shape_cast %47 : vector<8x1xf32> to vector<1x8x1xf32>
    %cst_27 = arith.constant dense<0.000000e+00> : vector<1xf32>
    %52 = vector.multi_reduction <add>, %51, %cst_27 [1, 2] : vector<1x8x1xf32> to vector<1xf32>
    %53 = vector.shape_cast %52 : vector<1xf32> to vector<1x1x1xf32>
    %54 = vector.extract %53[0, 0, 0] : f32 from vector<1x1x1xf32>
    %55 = vector.broadcast %54 : f32 to vector<8x1xf32>
    %56 = arith.divf %47, %55 : vector<8x1xf32>
    %57 = vector.broadcast %56 : vector<8x1xf32> to vector<8x128xf32>
    %58 = arith.mulf %57, %17 : vector<8x128xf32>
    %cst_28 = arith.constant dense<0.000000e+00> : vector<128x128xf32>
    %59 = tpu.matmul %17, %58, %cst_28 {dimension_numbers = #tpu.dot_dimension_numbers<[0], [0], [1], [1], [0, 1, 1, 1], [], []>} : vector<8x128xf32>, vector<8x128xf32>, vector<128x128xf32> -> vector<128x128xf32>
    %60 = tpu.iota {dimensions = array<i32: 0>} : vector<8x128xi32>
    %61 = tpu.iota {dimensions = array<i32: 1>} : vector<8x128xi32>
    %62 = vector.extract_strided_slice %59 {offsets = [0, 0], sizes = [8, 128], strides = [1, 1]} : vector<128x128xf32> to vector<8x128xf32>
    %63 = arith.cmpi eq, %60, %61 : vector<8x128xi32>
    %64 = arith.extui %63 : vector<8x128xi1> to vector<8x128xi32>
    %65 = arith.sitofp %64 : vector<8x128xi32> to vector<8x128xf32>
    %cst_29 = arith.constant 5.000000e-01 : f32
    %66 = vector.broadcast %cst_29 : f32 to vector<8x128xf32>
    %67 = arith.mulf %66, %65 : vector<8x128xf32>
    %68 = arith.addf %62, %67 : vector<8x128xf32>
    %c0_30 = arith.constant 0 : index
    %c0_31 = arith.constant 0 : index
    %69 = vector.load %arg15[%c0_30, %c0_31] : memref<8x1xf32, #tpu.memory_space<vmem>>, vector<8x1xf32>
    %70 = arith.mulf %56, %69 : vector<8x1xf32>
    %cst_32 = arith.constant dense<0.000000e+00> : vector<1x128xf32>
    %71 = tpu.matmul %70, %17, %cst_32 {dimension_numbers = #tpu.dot_dimension_numbers<[0], [0], [1], [1], [0, 1, 1, 1], [], []>} : vector<8x1xf32>, vector<8x128xf32>, vector<1x128xf32> -> vector<1x128xf32>
    %72 = vector.extract_strided_slice %68 {offsets = [0, 0], sizes = [1, 128], strides = [1, 1]} : vector<8x128xf32> to vector<1x128xf32>
    %73 = vector.extract_strided_slice %72 {offsets = [0, 0], sizes = [1, 1], strides = [1, 1]} : vector<1x128xf32> to vector<1x1xf32>
    %cst_33 = arith.constant 1.000000e+00 : f32
    %74 = vector.broadcast %cst_33 : f32 to vector<1x1xf32>
    %75 = arith.divf %74, %73 : vector<1x1xf32>
    %76 = vector.broadcast %75 : vector<1x1xf32> to vector<1x128xf32>
    %77 = arith.mulf %72, %76 : vector<1x128xf32>
    %78 = vector.extract_strided_slice %68 {offsets = [0, 0], sizes = [8, 1], strides = [1, 1]} : vector<8x128xf32> to vector<8x1xf32>
    %79 = vector.extract_strided_slice %71 {offsets = [0, 0], sizes = [1, 1], strides = [1, 1]} : vector<1x128xf32> to vector<1x1xf32>
    %80 = tpu.iota {dimensions = array<i32: 1>} : vector<1x128xi32>
    %c0_i32 = arith.constant 0 : i32
    %81 = vector.broadcast %c0_i32 : i32 to vector<1x128xi32>
    %82 = arith.cmpi eq, %80, %81 : vector<1x128xi32>
    %83 = vector.broadcast %75 : vector<1x1xf32> to vector<8x1xf32>
    %84 = arith.mulf %78, %83 : vector<8x1xf32>
    %85 = vector.broadcast %78 : vector<8x1xf32> to vector<8x128xf32>
    %86 = vector.broadcast %77 : vector<1x128xf32> to vector<8x128xf32>
    %87 = arith.mulf %85, %86 : vector<8x128xf32>
    %88 = arith.subf %68, %87 : vector<8x128xf32>
    %89 = vector.shape_cast %82 : vector<1x128xi1> to vector<1x128xi1>
    %90 = vector.broadcast %89 : vector<1x128xi1> to vector<8x128xi1>
    %91 = vector.shape_cast %84 : vector<8x1xf32> to vector<8x1xf32>
    %92 = vector.broadcast %91 : vector<8x1xf32> to vector<8x128xf32>
    %93 = arith.select %90, %92, %88 : vector<8x128xi1>, vector<8x128xf32>
    %94 = arith.mulf %79, %75 : vector<1x1xf32>
    %95 = vector.broadcast %79 : vector<1x1xf32> to vector<1x128xf32>
    %96 = arith.mulf %95, %77 : vector<1x128xf32>
    %97 = arith.subf %71, %96 : vector<1x128xf32>
    %98 = vector.shape_cast %94 : vector<1x1xf32> to vector<1x1xf32>
    %99 = vector.broadcast %98 : vector<1x1xf32> to vector<1x128xf32>
    %100 = arith.select %82, %99, %97 : vector<1x128xi1>, vector<1x128xf32>
    %101 = vector.extract_strided_slice %93 {offsets = [1, 0], sizes = [1, 128], strides = [1, 1]} : vector<8x128xf32> to vector<1x128xf32>
    %102 = vector.extract_strided_slice %101 {offsets = [0, 1], sizes = [1, 1], strides = [1, 1]} : vector<1x128xf32> to vector<1x1xf32>
    %cst_34 = arith.constant 1.000000e+00 : f32
    %103 = vector.broadcast %cst_34 : f32 to vector<1x1xf32>
    %104 = arith.divf %103, %102 : vector<1x1xf32>
    %105 = vector.broadcast %104 : vector<1x1xf32> to vector<1x128xf32>
    %106 = arith.mulf %101, %105 : vector<1x128xf32>
    %107 = vector.extract_strided_slice %93 {offsets = [0, 1], sizes = [8, 1], strides = [1, 1]} : vector<8x128xf32> to vector<8x1xf32>
    %108 = vector.extract_strided_slice %100 {offsets = [0, 1], sizes = [1, 1], strides = [1, 1]} : vector<1x128xf32> to vector<1x1xf32>
    %109 = tpu.iota {dimensions = array<i32: 1>} : vector<1x128xi32>
    %c1_i32 = arith.constant 1 : i32
    %110 = vector.broadcast %c1_i32 : i32 to vector<1x128xi32>
    %111 = arith.cmpi eq, %109, %110 : vector<1x128xi32>
    %112 = vector.broadcast %104 : vector<1x1xf32> to vector<8x1xf32>
    %113 = arith.mulf %107, %112 : vector<8x1xf32>
    %114 = vector.broadcast %107 : vector<8x1xf32> to vector<8x128xf32>
    %115 = vector.broadcast %106 : vector<1x128xf32> to vector<8x128xf32>
    %116 = arith.mulf %114, %115 : vector<8x128xf32>
    %117 = arith.subf %93, %116 : vector<8x128xf32>
    %118 = vector.shape_cast %111 : vector<1x128xi1> to vector<1x128xi1>
    %119 = vector.broadcast %118 : vector<1x128xi1> to vector<8x128xi1>
    %120 = vector.shape_cast %113 : vector<8x1xf32> to vector<8x1xf32>
    %121 = vector.broadcast %120 : vector<8x1xf32> to vector<8x128xf32>
    %122 = arith.select %119, %121, %117 : vector<8x128xi1>, vector<8x128xf32>
    %123 = arith.mulf %108, %104 : vector<1x1xf32>
    %124 = vector.broadcast %108 : vector<1x1xf32> to vector<1x128xf32>
    %125 = arith.mulf %124, %106 : vector<1x128xf32>
    %126 = arith.subf %100, %125 : vector<1x128xf32>
    %127 = vector.shape_cast %123 : vector<1x1xf32> to vector<1x1xf32>
    %128 = vector.broadcast %127 : vector<1x1xf32> to vector<1x128xf32>
    %129 = arith.select %111, %128, %126 : vector<1x128xi1>, vector<1x128xf32>
    %130 = vector.extract_strided_slice %122 {offsets = [2, 0], sizes = [1, 128], strides = [1, 1]} : vector<8x128xf32> to vector<1x128xf32>
    %131 = vector.extract_strided_slice %130 {offsets = [0, 2], sizes = [1, 1], strides = [1, 1]} : vector<1x128xf32> to vector<1x1xf32>
    %cst_35 = arith.constant 1.000000e+00 : f32
    %132 = vector.broadcast %cst_35 : f32 to vector<1x1xf32>
    %133 = arith.divf %132, %131 : vector<1x1xf32>
    %134 = vector.broadcast %133 : vector<1x1xf32> to vector<1x128xf32>
    %135 = arith.mulf %130, %134 : vector<1x128xf32>
    %136 = vector.extract_strided_slice %122 {offsets = [0, 2], sizes = [8, 1], strides = [1, 1]} : vector<8x128xf32> to vector<8x1xf32>
    %137 = vector.extract_strided_slice %129 {offsets = [0, 2], sizes = [1, 1], strides = [1, 1]} : vector<1x128xf32> to vector<1x1xf32>
    %138 = tpu.iota {dimensions = array<i32: 1>} : vector<1x128xi32>
    %c2_i32 = arith.constant 2 : i32
    %139 = vector.broadcast %c2_i32 : i32 to vector<1x128xi32>
    %140 = arith.cmpi eq, %138, %139 : vector<1x128xi32>
    %141 = vector.broadcast %133 : vector<1x1xf32> to vector<8x1xf32>
    %142 = arith.mulf %136, %141 : vector<8x1xf32>
    %143 = vector.broadcast %136 : vector<8x1xf32> to vector<8x128xf32>
    %144 = vector.broadcast %135 : vector<1x128xf32> to vector<8x128xf32>
    %145 = arith.mulf %143, %144 : vector<8x128xf32>
    %146 = arith.subf %122, %145 : vector<8x128xf32>
    %147 = vector.shape_cast %140 : vector<1x128xi1> to vector<1x128xi1>
    %148 = vector.broadcast %147 : vector<1x128xi1> to vector<8x128xi1>
    %149 = vector.shape_cast %142 : vector<8x1xf32> to vector<8x1xf32>
    %150 = vector.broadcast %149 : vector<8x1xf32> to vector<8x128xf32>
    %151 = arith.select %148, %150, %146 : vector<8x128xi1>, vector<8x128xf32>
    %152 = arith.mulf %137, %133 : vector<1x1xf32>
    %153 = vector.broadcast %137 : vector<1x1xf32> to vector<1x128xf32>
    %154 = arith.mulf %153, %135 : vector<1x128xf32>
    %155 = arith.subf %129, %154 : vector<1x128xf32>
    %156 = vector.shape_cast %152 : vector<1x1xf32> to vector<1x1xf32>
    %157 = vector.broadcast %156 : vector<1x1xf32> to vector<1x128xf32>
    %158 = arith.select %140, %157, %155 : vector<1x128xi1>, vector<1x128xf32>
    %159 = vector.extract_strided_slice %151 {offsets = [3, 0], sizes = [1, 128], strides = [1, 1]} : vector<8x128xf32> to vector<1x128xf32>
    %160 = vector.extract_strided_slice %159 {offsets = [0, 3], sizes = [1, 1], strides = [1, 1]} : vector<1x128xf32> to vector<1x1xf32>
    %cst_36 = arith.constant 1.000000e+00 : f32
    %161 = vector.broadcast %cst_36 : f32 to vector<1x1xf32>
    %162 = arith.divf %161, %160 : vector<1x1xf32>
    %163 = vector.broadcast %162 : vector<1x1xf32> to vector<1x128xf32>
    %164 = arith.mulf %159, %163 : vector<1x128xf32>
    %165 = vector.extract_strided_slice %151 {offsets = [0, 3], sizes = [8, 1], strides = [1, 1]} : vector<8x128xf32> to vector<8x1xf32>
    %166 = vector.extract_strided_slice %158 {offsets = [0, 3], sizes = [1, 1], strides = [1, 1]} : vector<1x128xf32> to vector<1x1xf32>
    %167 = tpu.iota {dimensions = array<i32: 1>} : vector<1x128xi32>
    %c3_i32 = arith.constant 3 : i32
    %168 = vector.broadcast %c3_i32 : i32 to vector<1x128xi32>
    %169 = arith.cmpi eq, %167, %168 : vector<1x128xi32>
    %170 = vector.broadcast %162 : vector<1x1xf32> to vector<8x1xf32>
    %171 = arith.mulf %165, %170 : vector<8x1xf32>
    %172 = vector.broadcast %165 : vector<8x1xf32> to vector<8x128xf32>
    %173 = vector.broadcast %164 : vector<1x128xf32> to vector<8x128xf32>
    %174 = arith.mulf %172, %173 : vector<8x128xf32>
    %175 = arith.subf %151, %174 : vector<8x128xf32>
    %176 = vector.shape_cast %169 : vector<1x128xi1> to vector<1x128xi1>
    %177 = vector.broadcast %176 : vector<1x128xi1> to vector<8x128xi1>
    %178 = vector.shape_cast %171 : vector<8x1xf32> to vector<8x1xf32>
    %179 = vector.broadcast %178 : vector<8x1xf32> to vector<8x128xf32>
    %180 = arith.select %177, %179, %175 : vector<8x128xi1>, vector<8x128xf32>
    %181 = arith.mulf %166, %162 : vector<1x1xf32>
    %182 = vector.broadcast %166 : vector<1x1xf32> to vector<1x128xf32>
    %183 = arith.mulf %182, %164 : vector<1x128xf32>
    %184 = arith.subf %158, %183 : vector<1x128xf32>
    %185 = vector.shape_cast %181 : vector<1x1xf32> to vector<1x1xf32>
    %186 = vector.broadcast %185 : vector<1x1xf32> to vector<1x128xf32>
    %187 = arith.select %169, %186, %184 : vector<1x128xi1>, vector<1x128xf32>
    %188 = vector.extract_strided_slice %180 {offsets = [4, 0], sizes = [1, 128], strides = [1, 1]} : vector<8x128xf32> to vector<1x128xf32>
    %189 = vector.extract_strided_slice %188 {offsets = [0, 4], sizes = [1, 1], strides = [1, 1]} : vector<1x128xf32> to vector<1x1xf32>
    %cst_37 = arith.constant 1.000000e+00 : f32
    %190 = vector.broadcast %cst_37 : f32 to vector<1x1xf32>
    %191 = arith.divf %190, %189 : vector<1x1xf32>
    %192 = vector.broadcast %191 : vector<1x1xf32> to vector<1x128xf32>
    %193 = arith.mulf %188, %192 : vector<1x128xf32>
    %194 = vector.extract_strided_slice %180 {offsets = [0, 4], sizes = [8, 1], strides = [1, 1]} : vector<8x128xf32> to vector<8x1xf32>
    %195 = vector.extract_strided_slice %187 {offsets = [0, 4], sizes = [1, 1], strides = [1, 1]} : vector<1x128xf32> to vector<1x1xf32>
    %196 = tpu.iota {dimensions = array<i32: 1>} : vector<1x128xi32>
    %c4_i32 = arith.constant 4 : i32
    %197 = vector.broadcast %c4_i32 : i32 to vector<1x128xi32>
    %198 = arith.cmpi eq, %196, %197 : vector<1x128xi32>
    %199 = vector.broadcast %191 : vector<1x1xf32> to vector<8x1xf32>
    %200 = arith.mulf %194, %199 : vector<8x1xf32>
    %201 = vector.broadcast %194 : vector<8x1xf32> to vector<8x128xf32>
    %202 = vector.broadcast %193 : vector<1x128xf32> to vector<8x128xf32>
    %203 = arith.mulf %201, %202 : vector<8x128xf32>
    %204 = arith.subf %180, %203 : vector<8x128xf32>
    %205 = vector.shape_cast %198 : vector<1x128xi1> to vector<1x128xi1>
    %206 = vector.broadcast %205 : vector<1x128xi1> to vector<8x128xi1>
    %207 = vector.shape_cast %200 : vector<8x1xf32> to vector<8x1xf32>
    %208 = vector.broadcast %207 : vector<8x1xf32> to vector<8x128xf32>
    %209 = arith.select %206, %208, %204 : vector<8x128xi1>, vector<8x128xf32>
    %210 = arith.mulf %195, %191 : vector<1x1xf32>
    %211 = vector.broadcast %195 : vector<1x1xf32> to vector<1x128xf32>
    %212 = arith.mulf %211, %193 : vector<1x128xf32>
    %213 = arith.subf %187, %212 : vector<1x128xf32>
    %214 = vector.shape_cast %210 : vector<1x1xf32> to vector<1x1xf32>
    %215 = vector.broadcast %214 : vector<1x1xf32> to vector<1x128xf32>
    %216 = arith.select %198, %215, %213 : vector<1x128xi1>, vector<1x128xf32>
    %217 = vector.extract_strided_slice %209 {offsets = [5, 0], sizes = [1, 128], strides = [1, 1]} : vector<8x128xf32> to vector<1x128xf32>
    %218 = vector.extract_strided_slice %217 {offsets = [0, 5], sizes = [1, 1], strides = [1, 1]} : vector<1x128xf32> to vector<1x1xf32>
    %cst_38 = arith.constant 1.000000e+00 : f32
    %219 = vector.broadcast %cst_38 : f32 to vector<1x1xf32>
    %220 = arith.divf %219, %218 : vector<1x1xf32>
    %221 = vector.broadcast %220 : vector<1x1xf32> to vector<1x128xf32>
    %222 = arith.mulf %217, %221 : vector<1x128xf32>
    %223 = vector.extract_strided_slice %209 {offsets = [0, 5], sizes = [8, 1], strides = [1, 1]} : vector<8x128xf32> to vector<8x1xf32>
    %224 = vector.extract_strided_slice %216 {offsets = [0, 5], sizes = [1, 1], strides = [1, 1]} : vector<1x128xf32> to vector<1x1xf32>
    %225 = tpu.iota {dimensions = array<i32: 1>} : vector<1x128xi32>
    %c5_i32 = arith.constant 5 : i32
    %226 = vector.broadcast %c5_i32 : i32 to vector<1x128xi32>
    %227 = arith.cmpi eq, %225, %226 : vector<1x128xi32>
    %228 = vector.broadcast %220 : vector<1x1xf32> to vector<8x1xf32>
    %229 = arith.mulf %223, %228 : vector<8x1xf32>
    %230 = vector.broadcast %223 : vector<8x1xf32> to vector<8x128xf32>
    %231 = vector.broadcast %222 : vector<1x128xf32> to vector<8x128xf32>
    %232 = arith.mulf %230, %231 : vector<8x128xf32>
    %233 = arith.subf %209, %232 : vector<8x128xf32>
    %234 = vector.shape_cast %227 : vector<1x128xi1> to vector<1x128xi1>
    %235 = vector.broadcast %234 : vector<1x128xi1> to vector<8x128xi1>
    %236 = vector.shape_cast %229 : vector<8x1xf32> to vector<8x1xf32>
    %237 = vector.broadcast %236 : vector<8x1xf32> to vector<8x128xf32>
    %238 = arith.select %235, %237, %233 : vector<8x128xi1>, vector<8x128xf32>
    %239 = arith.mulf %224, %220 : vector<1x1xf32>
    %240 = vector.broadcast %224 : vector<1x1xf32> to vector<1x128xf32>
    %241 = arith.mulf %240, %222 : vector<1x128xf32>
    %242 = arith.subf %216, %241 : vector<1x128xf32>
    %243 = vector.shape_cast %239 : vector<1x1xf32> to vector<1x1xf32>
    %244 = vector.broadcast %243 : vector<1x1xf32> to vector<1x128xf32>
    %245 = arith.select %227, %244, %242 : vector<1x128xi1>, vector<1x128xf32>
    %246 = vector.extract_strided_slice %238 {offsets = [6, 0], sizes = [1, 128], strides = [1, 1]} : vector<8x128xf32> to vector<1x128xf32>
    %247 = vector.extract_strided_slice %246 {offsets = [0, 6], sizes = [1, 1], strides = [1, 1]} : vector<1x128xf32> to vector<1x1xf32>
    %cst_39 = arith.constant 1.000000e+00 : f32
    %248 = vector.broadcast %cst_39 : f32 to vector<1x1xf32>
    %249 = arith.divf %248, %247 : vector<1x1xf32>
    %250 = vector.broadcast %249 : vector<1x1xf32> to vector<1x128xf32>
    %251 = arith.mulf %246, %250 : vector<1x128xf32>
    %252 = vector.extract_strided_slice %238 {offsets = [0, 6], sizes = [8, 1], strides = [1, 1]} : vector<8x128xf32> to vector<8x1xf32>
    %253 = vector.extract_strided_slice %245 {offsets = [0, 6], sizes = [1, 1], strides = [1, 1]} : vector<1x128xf32> to vector<1x1xf32>
    %254 = tpu.iota {dimensions = array<i32: 1>} : vector<1x128xi32>
    %c6_i32 = arith.constant 6 : i32
    %255 = vector.broadcast %c6_i32 : i32 to vector<1x128xi32>
    %256 = arith.cmpi eq, %254, %255 : vector<1x128xi32>
    %257 = vector.broadcast %249 : vector<1x1xf32> to vector<8x1xf32>
    %258 = arith.mulf %252, %257 : vector<8x1xf32>
    %259 = vector.broadcast %252 : vector<8x1xf32> to vector<8x128xf32>
    %260 = vector.broadcast %251 : vector<1x128xf32> to vector<8x128xf32>
    %261 = arith.mulf %259, %260 : vector<8x128xf32>
    %262 = arith.subf %238, %261 : vector<8x128xf32>
    %263 = vector.shape_cast %256 : vector<1x128xi1> to vector<1x128xi1>
    %264 = vector.broadcast %263 : vector<1x128xi1> to vector<8x128xi1>
    %265 = vector.shape_cast %258 : vector<8x1xf32> to vector<8x1xf32>
    %266 = vector.broadcast %265 : vector<8x1xf32> to vector<8x128xf32>
    %267 = arith.select %264, %266, %262 : vector<8x128xi1>, vector<8x128xf32>
    %268 = arith.mulf %253, %249 : vector<1x1xf32>
    %269 = vector.broadcast %253 : vector<1x1xf32> to vector<1x128xf32>
    %270 = arith.mulf %269, %251 : vector<1x128xf32>
    %271 = arith.subf %245, %270 : vector<1x128xf32>
    %272 = vector.shape_cast %268 : vector<1x1xf32> to vector<1x1xf32>
    %273 = vector.broadcast %272 : vector<1x1xf32> to vector<1x128xf32>
    %274 = arith.select %256, %273, %271 : vector<1x128xi1>, vector<1x128xf32>
    %275 = vector.extract_strided_slice %267 {offsets = [7, 0], sizes = [1, 128], strides = [1, 1]} : vector<8x128xf32> to vector<1x128xf32>
    %276 = vector.extract_strided_slice %275 {offsets = [0, 7], sizes = [1, 1], strides = [1, 1]} : vector<1x128xf32> to vector<1x1xf32>
    %cst_40 = arith.constant 1.000000e+00 : f32
    %277 = vector.broadcast %cst_40 : f32 to vector<1x1xf32>
    %278 = arith.divf %277, %276 : vector<1x1xf32>
    %279 = vector.broadcast %278 : vector<1x1xf32> to vector<1x128xf32>
    %280 = arith.mulf %275, %279 : vector<1x128xf32>
    %281 = vector.extract_strided_slice %274 {offsets = [0, 7], sizes = [1, 1], strides = [1, 1]} : vector<1x128xf32> to vector<1x1xf32>
    %282 = tpu.iota {dimensions = array<i32: 1>} : vector<1x128xi32>
    %c7_i32 = arith.constant 7 : i32
    %283 = vector.broadcast %c7_i32 : i32 to vector<1x128xi32>
    %284 = arith.cmpi eq, %282, %283 : vector<1x128xi32>
    %285 = arith.mulf %281, %278 : vector<1x1xf32>
    %286 = vector.broadcast %281 : vector<1x1xf32> to vector<1x128xf32>
    %287 = arith.mulf %286, %280 : vector<1x128xf32>
    %288 = arith.subf %274, %287 : vector<1x128xf32>
    %289 = vector.shape_cast %285 : vector<1x1xf32> to vector<1x1xf32>
    %290 = vector.broadcast %289 : vector<1x1xf32> to vector<1x128xf32>
    %291 = arith.select %284, %290, %288 : vector<1x128xi1>, vector<1x128xf32>
    %c0_41 = arith.constant 0 : index
    %c0_42 = arith.constant 0 : index
    %292 = vector.load %arg19[%c0_41, %c0_42] : memref<1x128xf32, #tpu.memory_space<vmem>>, vector<1x128xf32>
    tpu.vector_store %arg19[%c0_41, %c0_42], %291 {strides = array<i32>} : memref<1x128xf32, #tpu.memory_space<vmem>>, vector<1x128xf32>,
    %c0_43 = arith.constant 0 : index
    %c0_44 = arith.constant 0 : index
    %293 = vector.load %arg9[%c0_43, %c0_44] : memref<128x128xf32, #tpu.memory_space<vmem>>, vector<128x128xf32>
    %cst_45 = arith.constant dense<0.000000e+00> : vector<8x128xf32>
    %294 = tpu.matmul %17, %293, %cst_45 {dimension_numbers = #tpu.dot_dimension_numbers<[1], [0], [0], [1], [0, 0, 1, 1], [], []>} : vector<8x128xf32>, vector<128x128xf32>, vector<8x128xf32> -> vector<8x128xf32>
    %c0_46 = arith.constant 0 : index
    %c0_47 = arith.constant 0 : index
    %295 = vector.load %arg10[%c0_46, %c0_47] : memref<1x128xf32, #tpu.memory_space<vmem>>, vector<1x128xf32>
    %296 = vector.broadcast %295 : vector<1x128xf32> to vector<8x128xf32>
    %297 = arith.addf %294, %296 : vector<8x128xf32>
    %298 = math.tanh %297 : vector<8x128xf32>
    %c0_48 = arith.constant 0 : index
    %c0_49 = arith.constant 0 : index
    %299 = vector.load %arg11[%c0_48, %c0_49] : memref<128x128xf32, #tpu.memory_space<vmem>>, vector<128x128xf32>
    %cst_50 = arith.constant dense<0.000000e+00> : vector<8x128xf32>
    %300 = tpu.matmul %298, %299, %cst_50 {dimension_numbers = #tpu.dot_dimension_numbers<[1], [0], [0], [1], [0, 0, 1, 1], [], []>} : vector<8x128xf32>, vector<128x128xf32>, vector<8x128xf32> -> vector<8x128xf32>
    %c0_51 = arith.constant 0 : index
    %c0_52 = arith.constant 0 : index
    %301 = vector.load %arg12[%c0_51, %c0_52] : memref<1x128xf32, #tpu.memory_space<vmem>>, vector<1x128xf32>
    %302 = vector.broadcast %301 : vector<1x128xf32> to vector<8x128xf32>
    %303 = arith.addf %300, %302 : vector<8x128xf32>
    %304 = math.tanh %303 : vector<8x128xf32>
    %c0_53 = arith.constant 0 : index
    %c0_54 = arith.constant 0 : index
    %305 = vector.load %arg13[%c0_53, %c0_54] : memref<128x128xf32, #tpu.memory_space<vmem>>, vector<128x128xf32>
    %cst_55 = arith.constant dense<0.000000e+00> : vector<8x128xf32>
    %306 = tpu.matmul %304, %305, %cst_55 {dimension_numbers = #tpu.dot_dimension_numbers<[1], [0], [0], [1], [0, 0, 1, 1], [], []>} : vector<8x128xf32>, vector<128x128xf32>, vector<8x128xf32> -> vector<8x128xf32>
    %c0_56 = arith.constant 0 : index
    %c0_57 = arith.constant 0 : index
    %307 = vector.load %arg14[%c0_56, %c0_57] : memref<1x128xf32, #tpu.memory_space<vmem>>, vector<1x128xf32>
    %308 = vector.broadcast %307 : vector<1x128xf32> to vector<8x128xf32>
    %309 = arith.addf %306, %308 : vector<8x128xf32>
    %c0_58 = arith.constant 0 : index
    %c0_59 = arith.constant 0 : index
    %310 = vector.load %arg17[%c0_58, %c0_59] : memref<8x128xf32, #tpu.memory_space<vmem>>, vector<8x128xf32>
    tpu.vector_store %arg17[%c0_58, %c0_59], %309 {strides = array<i32>} : memref<8x128xf32, #tpu.memory_space<vmem>>, vector<8x128xf32>,
    return
  }
  func.func @transform_0(%arg0: i32, %arg1: memref<1xi32, #tpu.memory_space<smem>>) -> (i32, i32) {
    %c0_i32 = arith.constant 0 : i32
    %c0_i32_0 = arith.constant 0 : i32
    %c0_i32_1 = arith.constant 0 : i32
    return %c0_i32, %c0_i32_0 : i32, i32
  }
  func.func @transform_1(%arg0: i32, %arg1: memref<1xi32, #tpu.memory_space<smem>>) -> (i32, i32) {
    %c0_i32 = arith.constant 0 : i32
    %c0_i32_0 = arith.constant 0 : i32
    %c0_i32_1 = arith.constant 0 : i32
    return %c0_i32, %c0_i32_0 : i32, i32
  }
  func.func @transform_2(%arg0: i32, %arg1: memref<1xi32, #tpu.memory_space<smem>>) -> (i32, i32) {
    %c0_i32 = arith.constant 0 : i32
    %c0_i32_0 = arith.constant 0 : i32
    %c0_i32_1 = arith.constant 0 : i32
    return %c0_i32, %c0_i32_0 : i32, i32
  }
  func.func @transform_3(%arg0: i32, %arg1: memref<1xi32, #tpu.memory_space<smem>>) -> (i32, i32) {
    %c0_i32 = arith.constant 0 : i32
    %c0_i32_0 = arith.constant 0 : i32
    %c0_i32_1 = arith.constant 0 : i32
    return %c0_i32, %c0_i32_0 : i32, i32
  }
  func.func @transform_4(%arg0: i32, %arg1: memref<1xi32, #tpu.memory_space<smem>>) -> (i32, i32) {
    %c0_i32 = arith.constant 0 : i32
    %c0_i32_0 = arith.constant 0 : i32
    %c0_i32_1 = arith.constant 0 : i32
    return %c0_i32, %c0_i32_0 : i32, i32
  }
  func.func @transform_5(%arg0: i32, %arg1: memref<1xi32, #tpu.memory_space<smem>>) -> (i32, i32) {
    %c0_i32 = arith.constant 0 : i32
    %c0_i32_0 = arith.constant 0 : i32
    %c0_i32_1 = arith.constant 0 : i32
    return %c0_i32, %c0_i32_0 : i32, i32
  }
  func.func @transform_6(%arg0: i32, %arg1: memref<1xi32, #tpu.memory_space<smem>>) -> (i32, i32) {
    %c0_i32 = arith.constant 0 : i32
    %c0_i32_0 = arith.constant 0 : i32
    %c0_i32_1 = arith.constant 0 : i32
    return %c0_i32, %c0_i32_0 : i32, i32
  }
  func.func @transform_7(%arg0: i32, %arg1: memref<1xi32, #tpu.memory_space<smem>>) -> (i32, i32) {
    %c0_i32 = arith.constant 0 : i32
    %c0_i32_0 = arith.constant 0 : i32
    %c0_i32_1 = arith.constant 0 : i32
    return %c0_i32, %c0_i32_0 : i32, i32
  }
  func.func @transform_8(%arg0: i32, %arg1: memref<1xi32, #tpu.memory_space<smem>>) -> (i32, i32) {
    %c0_i32 = arith.constant 0 : i32
    %c0_i32_0 = arith.constant 0 : i32
    %c0_i32_1 = arith.constant 0 : i32
    return %c0_i32, %c0_i32_0 : i32, i32
  }
  func.func @transform_9(%arg0: i32, %arg1: memref<1xi32, #tpu.memory_space<smem>>) -> (i32, i32) {
    %c0_i32 = arith.constant 0 : i32
    %c0_i32_0 = arith.constant 0 : i32
    %c0_i32_1 = arith.constant 0 : i32
    return %c0_i32, %c0_i32_0 : i32, i32
  }
  func.func @transform_10(%arg0: i32, %arg1: memref<1xi32, #tpu.memory_space<smem>>) -> (i32, i32) {
    %c0_i32 = arith.constant 0 : i32
    %c0_i32_0 = arith.constant 0 : i32
    %c0_i32_1 = arith.constant 0 : i32
    return %c0_i32, %c0_i32_0 : i32, i32
  }
  func.func @transform_11(%arg0: i32, %arg1: memref<1xi32, #tpu.memory_space<smem>>) -> (i32, i32) {
    %c0_i32 = arith.constant 0 : i32
    %c0_i32_0 = arith.constant 0 : i32
    %c0_i32_1 = arith.constant 0 : i32
    return %c0_i32, %c0_i32_0 : i32, i32
  }
  func.func @transform_12(%arg0: i32, %arg1: memref<1xi32, #tpu.memory_space<smem>>) -> (i32, i32) {
    %c0_i32 = arith.constant 0 : i32
    %c0_i32_0 = arith.constant 0 : i32
    %c0_i32_1 = arith.constant 0 : i32
    return %c0_i32, %c0_i32_0 : i32, i32
  }
  func.func @transform_13(%arg0: i32, %arg1: memref<1xi32, #tpu.memory_space<smem>>) -> (i32, i32) {
    %c0_i32 = arith.constant 0 : i32
    %c0_i32_0 = arith.constant 0 : i32
    %c0_i32_1 = arith.constant 0 : i32
    return %c0_i32, %c0_i32_0 : i32, i32
  }
  func.func @transform_14(%arg0: i32, %arg1: memref<1xi32, #tpu.memory_space<smem>>) -> (i32, i32) {
    %c0_i32 = arith.constant 0 : i32
    %c0_i32_0 = arith.constant 0 : i32
    %c0_i32_1 = arith.constant 0 : i32
    return %c0_i32, %c0_i32_0 : i32, i32
  }
  func.func @transform_15(%arg0: i32, %arg1: memref<1xi32, #tpu.memory_space<smem>>) -> (i32, i32) {
    %c0_i32 = arith.constant 0 : i32
    %c0_i32_0 = arith.constant 0 : i32
    %c0_i32_1 = arith.constant 0 : i32
    return %c0_i32, %c0_i32_0 : i32, i32
  }
  func.func @transform_16(%arg0: i32, %arg1: memref<1xi32, #tpu.memory_space<smem>>) -> (i32, i32) {
    %c0_i32 = arith.constant 0 : i32
    %c0_i32_0 = arith.constant 0 : i32
    %c0_i32_1 = arith.constant 0 : i32
    return %c0_i32, %c0_i32_0 : i32, i32
  }
  func.func @transform_17(%arg0: i32, %arg1: memref<1xi32, #tpu.memory_space<smem>>) -> (i32, i32) {
    %c0_i32 = arith.constant 0 : i32
    %c0_i32_0 = arith.constant 0 : i32
    %c0_i32_1 = arith.constant 0 : i32
    return %c0_i32, %c0_i32_0 : i32, i32
  }
}

</mosaic_0001>

<bundles_post_ra>
// kernel: autoencoder_with_regression_forward.1
= control target key start
LH: loop header
LB: loop body
LE: loop exit
PB: predicated region body
PF: predicated region fallthrough
CT: control target
= control target key end

     0   :  { %s1788_s0 = inlined_call_operand.<no memory space> [shape: s32[1], index: 0, kind: input, shape index: {}]   ;;  %s1789_s1 = inlined_call_operand.vmem [shape: f32[8,128], index: 1, kind: input, shape index: {}]   ;;  %s1790_s2 = inlined_call_operand.hbm [shape: f32[128,128], index: 2, kind: input, shape index: {}]   ;;  %s1791_s3 = inlined_call_operand.vmem [shape: f32[1,128], index: 3, kind: input, shape index: {}]   ;;  %s1792_s4 = inlined_call_operand.hbm [shape: f32[128,128], index: 4, kind: input, shape index: {}]   ;;  %s1793_s5 = inlined_call_operand.vmem [shape: f32[1,128], index: 5, kind: input, shape index: {}]   ;;  %s1794_s6 = inlined_call_operand.hbm [shape: f32[128,128], index: 6, kind: input, shape index: {}]   ;;  %s1795_s7 = inlined_call_operand.vmem [shape: f32[1,128], index: 7, kind: input, shape index: {}]   ;;  %s1796_s8 = inlined_call_operand.hbm [shape: f32[128,128], index: 8, kind: input, shape index: {}]   ;;  %s1797_s9 = inlined_call_operand.vmem [shape: f32[1,128], index: 9, kind: input, shape index: {}]   ;;  %s1798_s10 = inlined_call_operand.hbm [shape: f32[128,128], index: 10, kind: input, shape index: {}]   ;;  %s1799_s11 = inlined_call_operand.vmem [shape: f32[1,128], index: 11, kind: input, shape index: {}]   ;;  %s1800_s12 = inlined_call_operand.hbm [shape: f32[128,128], index: 12, kind: input, shape index: {}]   ;;  %s1801_s13 = inlined_call_operand.vmem [shape: f32[1,128], index: 13, kind: input, shape index: {}]   ;;  %s1802_s14 = inlined_call_operand.vmem [shape: f32[8,1], index: 14, kind: input, shape index: {}]   ;;  %s1803_s15 = inlined_call_operand.hbm [shape: f32[8,128], index: 15, kind: output, shape index: {0}]   ;;  %s1804_s16 = inlined_call_operand.hbm [shape: f32[8,128], index: 16, kind: output, shape index: {1}]   ;;  %s1805_s17 = inlined_call_operand.vmem [shape: f32[8,128], index: 17, kind: output, shape index: {2}]   ;;  %s1806_s18 = inlined_call_operand.vmem [shape: f32[1,128], index: 18, kind: output, shape index: {3}]  }
   0x1   :  { %1807 = sst [smem:[#allocation24_spill]] %s1788_s0 }
   0x2   :  { %1808 = sst [smem:[#allocation25_spill]] %s1789_s1 }
   0x3   :  { %1809 = sst [smem:[#allocation26_spill]] %s1790_s2 }
   0x4   :  { %25 = vsyncpa [#allocation5], 0 }
   0x5   :  { %26 = vsyncpa [#allocation8], 0 }
   0x6   :  { %27 = vsyncpa [#allocation11], 0 }
   0x7   :  { %28 = vsyncpa [#allocation14], 0 }
   0x8   :  { %29 = vsyncpa [#allocation6], 0 }
   0x9   :  { %30 = vsyncpa [#allocation17], 0  ;;  %s52_s29 = sshll.u32 %s1792_s4, 4  ;;  %s1468_s30 = smov [#allocation7]   ;;  %s53_s29 = int_to_ptr.hbm [resolvable:$true] %s52_s29 }
   0xa   :  { %s54_s0 = sshll.u32 %s1468_s30, 4  ;;  %s82_s20 = sshll.u32 %s1796_s8, 4  ;;  %s55_s0 = int_to_ptr.vmem [resolvable:$true] %s54_s0  ;;  %s83_s20 = int_to_ptr.hbm [resolvable:$true] %s82_s20 }
   0xb   :  { %s1469_s21 = smov 128   ;;  %s1470_s22 = smov 8  }
   0xc   :  { %60 = dma.hbm_to_vmem [thread:$0]  %s53_s29, 2048, %s55_s0, [#allocation8], %s1469_s21, %s1469_s21, %s1470_s22  }
   0xd   :  { %s1471_s2 = smov [#allocation10]   ;;  %s1810_s4 = sld [smem:[#allocation26_spill]] }
   0xe   :  { %s84_s23 = sshll.u32 %s1471_s2, 4  ;;  %s67_s28 = sshll.u32 %s1794_s6, 4  ;;  %s85_s23 = int_to_ptr.vmem [resolvable:$true] %s84_s23  ;;  %s68_s28 = int_to_ptr.hbm [resolvable:$true] %s67_s28 }
   0xf   :  { %90 = dma.hbm_to_vmem [thread:$0]  %s83_s20, 2048, %s85_s23, [#allocation11], %s1469_s21, %s1469_s21, %s1470_s22  }
  0x10   :  { %s1472_s30 = smov [#allocation4]   ;;  %s1473_s29 = smov [#allocation9]  }
  0x11   :  { %s39_s19 = sshll.u32 %s1472_s30, 4  ;;  %s69_s0 = sshll.u32 %s1473_s29, 4  ;;  %s40_s19 = int_to_ptr.vmem [resolvable:$true] %s39_s19  ;;  %s70_s0 = int_to_ptr.vmem [resolvable:$true] %s69_s0 }
  0x12   :  { %s97_s24 = sshll.u32 %s1798_s10, 4  ;;  %s112_s23 = sshll.u32 %s1800_s12, 4  ;;  %s98_s24 = int_to_ptr.hbm [resolvable:$true] %s97_s24  ;;  %s113_s23 = int_to_ptr.hbm [resolvable:$true] %s112_s23 }
  0x13   :  { %s37_s26 = sshll.u32 %s1810_s4, 4  ;;  %s1474_s25 = smov [#allocation12]   ;;  %s38_s26 = int_to_ptr.hbm [resolvable:$true] %s37_s26 }
  0x14   :  { %45 = dma.hbm_to_vmem [thread:$0]  %s38_s26, 2048, %s40_s19, [#allocation5], %s1469_s21, %s1469_s21, %s1470_s22  }
  0x15   :  { %75 = dma.hbm_to_vmem [thread:$0]  %s68_s28, 2048, %s70_s0, [#allocation8], %s1469_s21, %s1469_s21, %s1470_s22  }
  0x16   :  { %s99_s4 = sshll.u32 %s1474_s25, 4  ;;  %s1475_s26 = smov [#allocation13]   ;;  %s100_s4 = int_to_ptr.vmem [resolvable:$true] %s99_s4 }
  0x17   :  { %105 = dma.hbm_to_vmem [thread:$0]  %s98_s24, 2048, %s100_s4, [#allocation11], %s1469_s21, %s1469_s21, %s1470_s22  }
  0x18   :  { %s114_s10 = sshll.u32 %s1475_s26, 4  ;;  %s115_s10 = int_to_ptr.vmem [resolvable:$true] %s114_s10 }
  0x19   :  { %120 = dma.hbm_to_vmem [thread:$0]  %s113_s23, 2048, %s115_s10, [#allocation14], %s1469_s21, %s1469_s21, %s1470_s22  }
  0x1a   :  { %1456 = dma.done.wait [#allocation5], 2048  }
  0x1b   :  { %1457 = vsyncadd [#allocation5], 4294965248 }
  0x1c   :  { %1458 = dma.done.wait [#allocation8], 4096  }
  0x1d   :  { %1459 = vsyncadd [#allocation8], 4294963200 }
  0x1e   :  { %1460 = dma.done.wait [#allocation11], 4096  }
  0x1f   :  { %1461 = vsyncadd [#allocation11], 4294963200 }
  0x20   :  { %1462 = dma.done.wait [#allocation14], 2048  }
  0x21   :  { %1463 = vsyncadd [#allocation14], 4294965248  ;;  %v165_v0 = vld [vmem:[#allocation4 + $0x78] sm:$0xff]  ;;  %v164_v1 = vld [vmem:[#allocation4 + $0x70] sm:$0xff]  ;;  %s1811_s22 = sld [smem:[#allocation25_spill]]  ;;  %v1476_v63 = vmov 1.0  }
  0x22   :  { %170 = vmatpush.msra.mxu0 %v165_v0  ;;  %v163_v2 = vld [vmem:[#allocation4 + $0x68] sm:$0xff]  ;;  %v162_v3 = vld [vmem:[#allocation4 + $0x60] sm:$0xff]  ;;  %v206_v4 = vld [vmem:[#allocation7 + $0x78] sm:$0xff]  ;;  %s1812_s1 = sld [smem:[#allocation24_spill]]  ;;  %v301_v0 = vlaneseq  ;;  %vm311_vm2 = vcmask 64512   ;;  %vm323_vm5 = vcmask 7168  }
  0x23   :  { %v161_v5 = vld [vmem:[#allocation4 + $0x58] sm:$0xff]  ;;  %211 = vmatpush.msra.mxu1 %v206_v4  ;;  %v205_v6 = vld [vmem:[#allocation7 + $0x70] sm:$0xff]  ;;  %v204_v7 = vld [vmem:[#allocation7 + $0x68] sm:$0xff]  ;;  %s1123_s12 = sshll.u32 %s1803_s15, 4  ;;  %s1487_s21 = smov [#allocation16]   ;;  %s1124_s12 = int_to_ptr.hbm [resolvable:$true] %s1123_s12 }
  0x24   :  { %171 = vmatpush.msra.mxu0 %v164_v1  ;;  %v160_v8 = vld [vmem:[#allocation4 + $0x50] sm:$0xff]  ;;  %v159_v9 = vld [vmem:[#allocation4 + $0x48] sm:$0xff]  ;;  %v203_v10 = vld [vmem:[#allocation7 + $0x60] sm:$0xff]  ;;  %v1639_v1 = vshrl.u32 %v301_v0, 7  ;;  %s1134_s28 = sshll.u32 %s1804_s16, 4  ;;  %s1135_s28 = int_to_ptr.hbm [resolvable:$true] %s1134_s28 }
  0x25   :  { %212 = vmatpush.msra.mxu1 %v205_v6  ;;  %v202_v11 = vld [vmem:[#allocation7 + $0x58] sm:$0xff]  ;;  %v158_v12 = vld [vmem:[#allocation4 + $0x40] sm:$0xff]  ;;  %v201_v13 = vld [vmem:[#allocation7 + $0x50] sm:$0xff]  ;;  %v1477_v6 = vmov 0.0  }
  0x26   :  { %172 = vmatpush.msra.mxu0 %v163_v2  ;;  %v157_v14 = vld [vmem:[#allocation4 + $0x38] sm:$0xff]  ;;  %v200_v15 = vld [vmem:[#allocation7 + $0x48] sm:$0xff]  ;;  %v156_v16 = vld [vmem:[#allocation4 + $0x30] sm:$0xff]  ;;  %v1641_v2 = vand.u32 127, %v301_v0 }
  0x27   :  { %213 = vmatpush.msra.mxu1 %v204_v7  ;;  %v199_v17 = vld [vmem:[#allocation7 + $0x40] sm:$0xff]  ;;  %v155_v18 = vld [vmem:[#allocation4 + $0x28] sm:$0xff]  ;;  %v198_v19 = vld [vmem:[#allocation7 + $0x38] sm:$0xff] }
  0x28   :  { %173 = vmatpush.msra.mxu0 %v162_v3  ;;  %v154_v20 = vld [vmem:[#allocation4 + $0x20] sm:$0xff]  ;;  %v197_v21 = vld [vmem:[#allocation7 + $0x30] sm:$0xff]  ;;  %v153_v22 = vld [vmem:[#allocation4 + $0x18] sm:$0xff]  ;;  %s274_s2 = scalar_lea.vmem [#allocation15], %s1812_s1  ;;  %vm307_vm0 = vcmp.ne.s32.totalorder %v1639_v1, %v1641_v2  ;;  %vm481_vm10 = vcmp.eq.s32.totalorder %v1639_v1, %v1641_v2  ;;  %vm564_vm15 = vcmp.eq.s32.totalorder %v1641_v2, 0 }
  0x29   :  { %214 = vmatpush.msra.mxu1 %v203_v10  ;;  %v196_v23 = vld [vmem:[#allocation7 + $0x28] sm:$0xff]  ;;  %v152_v24 = vld [vmem:[#allocation4 + $0x10] sm:$0xff]  ;;  %v150_v26 = vld [vmem:[#allocation4] sm:$0xff] }
  0x2a   :  { %174 = vmatpush.msra.mxu0 %v161_v5  ;;  %v151_v25 = vld [vmem:[#allocation4 + $0x8] sm:$0xff]  ;;  %v149_v27 = vld [vmem:[%s1811_s22] sm:$0xff]  ;;  %v194_v29 = vld [vmem:[#allocation7 + $0x18] sm:$0xff]  ;;  %s1132_s22 = sshll.u32 %s1487_s21, 4  ;;  %s1133_s22 = int_to_ptr.vmem [resolvable:$true] %s1132_s22 }
  0x2b   :  { %215 = vmatpush.msra.mxu1 %v202_v11  ;;  %v195_v28 = vld [vmem:[#allocation7 + $0x20] sm:$0xff]  ;;  %v193_v30 = vld [vmem:[#allocation7 + $0x10] sm:$0xff]  ;;  %v192_v31 = vld [vmem:[#allocation7 + $0x8] sm:$0xff] }
  0x2c   :  { %175 = vmatpush.msra.mxu0 %v160_v8  ;;  %v191_v32 = vld [vmem:[#allocation7] sm:$0xff]  ;;  %v247_v33 = vld [vmem:[#allocation9 + $0x78] sm:$0xff]  ;;  %v246_v34 = vld [vmem:[#allocation9 + $0x70] sm:$0xff] }
  0x2d   :  { %216 = vmatpush.msra.mxu1 %v201_v13  ;;  %252 = vmatpush.msra.mxu2 %v247_v33  ;;  %v245_v35 = vld [vmem:[#allocation9 + $0x68] sm:$0xff]  ;;  %v244_v36 = vld [vmem:[#allocation9 + $0x60] sm:$0xff]  ;;  %v243_v37 = vld [vmem:[#allocation9 + $0x58] sm:$0xff] }
  0x2e   :  { %176 = vmatpush.msra.mxu0 %v159_v9  ;;  %v242_v38 = vld [vmem:[#allocation9 + $0x50] sm:$0xff]  ;;  %v241_v39 = vld [vmem:[#allocation9 + $0x48] sm:$0xff]  ;;  %v240_v40 = vld [vmem:[#allocation9 + $0x40] sm:$0xff] }
  0x2f   :  { %217 = vmatpush.msra.mxu1 %v200_v15  ;;  %253 = vmatpush.msra.mxu2 %v246_v34  ;;  %v239_v41 = vld [vmem:[#allocation9 + $0x38] sm:$0xff]  ;;  %v238_v42 = vld [vmem:[#allocation9 + $0x30] sm:$0xff]  ;;  %v237_v43 = vld [vmem:[#allocation9 + $0x28] sm:$0xff] }
  0x30   :  { %177 = vmatpush.msra.mxu0 %v158_v12  ;;  %v1229_v44 = vld [vmem:[%s1791_s3] ss:$0 sm:$0xff]  ;;  %v235_v49 = vld [vmem:[#allocation9 + $0x18] sm:$0xff]  ;;  %v234_v50 = vld [vmem:[#allocation9 + $0x10] sm:$0xff] }
  0x31   :  { %218 = vmatpush.msra.mxu1 %v199_v17  ;;  %254 = vmatpush.msra.mxu2 %v245_v35  ;;  %v236_v48 = vld [vmem:[#allocation9 + $0x20] sm:$0xff]  ;;  %v233_v51 = vld [vmem:[#allocation9 + $0x8] sm:$0xff] }
  0x32   :  { %178 = vmatpush.msra.mxu0 %v157_v14  ;;  %v232_v52 = vld [vmem:[#allocation9] sm:$0xff]  ;;  %v1043_v0 = vld [vmem:[#allocation12 + $0x48] sm:$0xff] }
  0x33   :  { %219 = vmatpush.msra.mxu1 %v198_v19  ;;  %255 = vmatpush.msra.mxu2 %v244_v36  ;;  %v1230_v53 = vld [vmem:[%s1793_s5] ss:$0 sm:$0xff]  ;;  %v1008_v36 = vld [vmem:[#allocation10 + $0x78] sm:$0xff] }
  0x34   :  { %179 = vmatpush.msra.mxu0 %v156_v16  ;;  %v1231_v57 = vld [vmem:[%s1795_s7] ss:$0 sm:$0xff] }
  0x35   :  { %220 = vmatpush.msra.mxu1 %v197_v21  ;;  %256 = vmatpush.msra.mxu2 %v243_v37  ;;  %v1007_v37 = vld [vmem:[#allocation10 + $0x70] sm:$0xff] }
  0x36   :  { %180 = vmatpush.msra.mxu0 %v155_v18 }
  0x37   :  { %221 = vmatpush.msra.mxu1 %v196_v23  ;;  %257 = vmatpush.msra.mxu2 %v242_v38  ;;  %v1006_v38 = vld [vmem:[#allocation10 + $0x68] sm:$0xff] }
  0x38   :  { %181 = vmatpush.msra.mxu0 %v154_v20 }
  0x39   :  { %222 = vmatpush.msra.mxu1 %v195_v28  ;;  %258 = vmatpush.msra.mxu2 %v241_v39  ;;  %v1005_v39 = vld [vmem:[#allocation10 + $0x60] sm:$0xff] }
  0x3a   :  { %182 = vmatpush.msra.mxu0 %v153_v22 }
  0x3b   :  { %223 = vmatpush.msra.mxu1 %v194_v29  ;;  %259 = vmatpush.msra.mxu2 %v240_v40  ;;  %v1004_v40 = vld [vmem:[#allocation10 + $0x58] sm:$0xff] }
  0x3c   :  { %183 = vmatpush.msra.mxu0 %v152_v24 }
  0x3d   :  { %224 = vmatpush.msra.mxu1 %v193_v30  ;;  %260 = vmatpush.msra.mxu2 %v239_v41  ;;  %v1003_v41 = vld [vmem:[#allocation10 + $0x50] sm:$0xff] }
  0x3e   :  { %184 = vmatpush.msra.mxu0 %v151_v25 }
  0x3f   :  { %225 = vmatpush.msra.mxu1 %v192_v31  ;;  %261 = vmatpush.msra.mxu2 %v238_v42  ;;  %v1002_v42 = vld [vmem:[#allocation10 + $0x48] sm:$0xff] }
  0x40   :  { %185 = vmatpush.msra.mxu0 %v150_v26 }
  0x41   :  { %186 = vmatmul.f32.vlgmr.msra.gmra.mxu0 %v149_v27  ;;  %226 = vmatpush.msra.mxu1 %v191_v32 }
  0x42   :  { %262 = vmatpush.msra.mxu2 %v237_v43  ;;  %v1001_v43 = vld [vmem:[#allocation10 + $0x40] sm:$0xff] }
  0x44   :  { %263 = vmatpush.msra.mxu2 %v236_v48 }
  0x46   :  { %264 = vmatpush.msra.mxu2 %v235_v49  ;;  %v996_v49 = vld [vmem:[#allocation10 + $0x18] sm:$0xff] }
  0x48   :  { %265 = vmatpush.msra.mxu2 %v234_v50  ;;  %v995_v50 = vld [vmem:[#allocation10 + $0x10] sm:$0xff] }
  0x4a   :  { %266 = vmatpush.msra.mxu2 %v233_v51  ;;  %v994_v51 = vld [vmem:[#allocation10 + $0x8] sm:$0xff] }
  0x4c   :  { %267 = vmatpush.msra.mxu2 %v232_v52  ;;  %v993_v52 = vld [vmem:[#allocation10] sm:$0xff] }
  0xbe   :  { %v187_v45 = vpop.f32.mrf.mxu0 }
  0xbf   :  { %v188_v46 = vadd.f32 %v1229_v44, %v187_v45  ;;  %v1000_v44 = vld [vmem:[#allocation10 + $0x38] sm:$0xff]  ;;  %v999_v45 = vld [vmem:[#allocation10 + $0x30] sm:$0xff] }
  0xc1   :  { %1236 = vtanh.f32 %v188_v46  ;;  %v998_v46 = vld [vmem:[#allocation10 + $0x28] sm:$0xff] }
  0xc7   :  { %v1237_v47 = vpop.eup %1236 }
  0xc8   :  { %227 = vmatmul.f32.vlgmr.msra.gmra.mxu1 %v1237_v47  ;;  %v997_v47 = vld [vmem:[#allocation10 + $0x20] sm:$0xff] }
 0x145   :  { %v228_v54 = vpop.f32.mrf.mxu1 }
 0x146   :  { %v229_v55 = vadd.f32 %v1230_v53, %v228_v54 }
 0x148   :  { %1238 = vtanh.f32 %v229_v55 }
 0x14e   :  { %v1239_v56 = vpop.eup %1238 }
 0x14f   :  { %268 = vmatmul.f32.vlgmr.msra.gmra.mxu2 %v1239_v56  ;;  %v1478_v56 = vmov 0  }
 0x150   :  { %1205 = vset.pattern.permute.xlu2 %v1478_v56  ;;  %1206 = vset.pattern.permute.xlu0 %v1478_v56 }
 0x1d2   :  { %v269_v58 = vpop.f32.mrf.mxu2 }
 0x1d3   :  { %v1631_v59 = vadd.f32 %v1231_v57, %v269_v58  ;;  %v1049_v57 = vld [vmem:[#allocation12 + $0x78] sm:$0xff]  ;;  %v1048_v58 = vld [vmem:[#allocation12 + $0x70] sm:$0xff] }
 0x1d5   :  { %272 = vst [vmem:[#allocation15] sm:$0xff] %v1631_v59 }
 0x1dc   :  { %v1232_v60 = vld [vmem:[%s274_s2] ss:$0 sm:$0xff] }
 0x1dd   :  { %v277_v61 = vsub.f32 %v1631_v59, %v1232_v60  ;;  %v1047_v60 = vld [vmem:[#allocation12 + $0x68] sm:$0xff] }
 0x1df   :  { %v278_v62 = vmul.f32 %v277_v61, %v277_v61  ;;  %v1046_v61 = vld [vmem:[#allocation12 + $0x60] sm:$0xff] }
 0x1e1   :  { %279 = vadd.xlane.f32.xlu0 %v278_v62  ;;  %296 = vmatpush.xpose.msrb.mxu0 %v278_v62  ;;  %v1045_v62 = vld [vmem:[#allocation12 + $0x58] sm:$0xff] }
 0x1e4   :  { %297 = vmatmul.f32.vlgmr.msrb.gmra.mxu0 %v1476_v63  ;;  %v1044_v63 = vld [vmem:[#allocation12 + $0x50] sm:$0xff] }
 0x1e5   :  { %538 = vmatpush.msra.mxu0 %v1631_v59 }
 0x254   :  { %v280_v5 = vpop.xlane.xlu0 %279 }
 0x255   :  { %v318_v9 = vmul.f32 -0.5, %v280_v5 }
 0x257   :  { %v319_v10 = vmul.f32 1.442695, %v318_v9 }
 0x259   :  { %1240 = vpow2.f32 %v319_v10 }
 0x25f   :  { %v1241_v12 = vpop.eup %1240 }
 0x261   :  { %v298_v3 = vpop.f32.mrf.mxu0 }
 0x262   :  { %v305_v4 = vperm.slane %v298_v3, 0 }
 0x264   :  { %vm306_vm1 = vcmp.lt.f32.partialorder %v305_v4, %v280_v5  ;;  %v1041_v4 = vld [vmem:[#allocation12 + $0x38] sm:$0xff]  ;;  %v1179_v5 = vsel %vm481_vm10, 1.0, %v1477_v6 }
 0x265   :  { %vm308_vm3 = vmand %vm306_vm1, %vm307_vm0  ;;  %v484_v9 = vmul.f32 0.5, %v1179_v5 }
 0x266   :  { %v1161_v7 = vsel %vm308_vm3, 1.0, %v1477_v6 }
 0x267   :  { %v312_v8 = vsel %vm311_vm2, %v1161_v7, 0.0  ;;  %v1040_v7 = vld [vmem:[#allocation12 + $0x30] sm:$0xff] }
 0x268   :  { %313 = vadd.xlane.f32.xlu0 %v312_v8  ;;  %v1039_v8 = vld [vmem:[#allocation12 + $0x28] sm:$0xff] }
 0x2db   :  { %v314_v11 = vpop.xlane.xlu0 %313 }
 0x2dc   :  { %vm315_vm4 = vcmp.lt.f32.partialorder %v314_v11, 4.0 }
 0x2dd   :  { %v1162_v13 = vsel %vm315_vm4, 1.0, %v1477_v6  ;;  %v1035_v6 = vld [vmem:[#allocation12 + $0x8] sm:$0xff] }
 0x2de   :  { %v321_v14 = vmul.f32 %v1241_v12, %v1162_v13  ;;  %v1038_v12 = vld [vmem:[#allocation12 + $0x20] sm:$0xff]  ;;  %v1037_v13 = vld [vmem:[#allocation12 + $0x18] sm:$0xff] }
 0x2e0   :  { %322 = vst [vmem:[%s1805_s17] sm:$0xff] %v321_v14  ;;  %v324_v15 = vsel %vm323_vm5, %v321_v14, 0.0  ;;  %vm618_vm5 = vcmp.eq.s32.totalorder %v1641_v2, 1 }
 0x2e1   :  { %325 = vadd.xlane.f32.xlu1 %v324_v15  ;;  %v1034_v15 = vld [vmem:[#allocation12] sm:$0xff] }
 0x31b   :  { %351 = vxpose.xlu1.b32.start.end [1/1] (short) %v1631_v59, 128 }
 0x354   :  { %v326_v16 = vpop.xlane.xlu1 %325 }
 0x355   :  { %v327_v17 = vrot.slane %v326_v16, 4 }
 0x357   :  { %v328_v18 = vadd.f32 %v327_v17, %v326_v16 }
 0x359   :  { %v329_v19 = vrot.slane %v328_v18, 2 }
 0x35b   :  { %v330_v20 = vadd.f32 %v329_v19, %v328_v18 }
 0x35d   :  { %v331_v21 = vrot.slane %v330_v20, 1 }
 0x35f   :  { %v332_v22 = vadd.f32 %v331_v21, %v330_v20 }
 0x361   :  { %1183 = vpush %v332_v22 }
 0x392   :  { %s1184_s24 = spop %1183 }
 0x393   :  { %v334_v23 = vstv %s1184_s24 }
 0x394   :  { %1242 = vrcp.f32 %v334_v23  ;;  %v346_v27 = vand.u32 2147483648, %v334_v23  ;;  %v344_v29 = vand.u32 2147483647, %v334_v23  ;;  %vm340_vm7 = vweird.f32 %v334_v23 }
 0x396   :  { %v347_v31 = vor.u32 1.1754944e-38, %v346_v27  ;;  %vm345_vm9 = vcmp.eq.f32.partialorder %v344_v29, 8.507059e+37 }
 0x39a   :  { %v1243_v24 = vpop.eup %1242 }
 0x39b   :  { %v336_v25 = vmul.f32 %v1243_v24, %v334_v23  ;;  %vm341_vm6 = vweird.f32 %v1243_v24 }
 0x39c   :  { %vm342_vm8 = vmor %vm340_vm7, %vm341_vm6 }
 0x39d   :  { %v337_v26 = vsub.f32 1.0, %v336_v25 }
 0x39f   :  { %v338_v28 = vmul.f32 %v1243_v24, %v337_v26 }
 0x3a1   :  { %v339_v30 = vadd.f32 %v1243_v24, %v338_v28 }
 0x3a3   :  { %v343_v32 = vsel %vm342_vm8, %v1243_v24, %v339_v30 }
 0x3a4   :  { %v348_v33 = vsel %vm345_vm9, %v347_v31, %v343_v32  ;;  %v1233_v31 = vld [vmem:[%s1797_s9] ss:$0 sm:$0xff]  ;;  %vm677_vm9 = vcmp.eq.s32.totalorder %v1641_v2, 2 }
 0x3a5   :  { %v1652_v34 = vmul.f32 %v348_v33, %v321_v14  ;;  %v1036_v14 = vld [vmem:[#allocation12 + $0x10] sm:$0xff] }
 0x3a7   :  { %v350_v35 = vmul.f32 %v1652_v34, %v1631_v59 }
 0x3a9   :  { %446 = vmatpush.msrb.mxu1 %v350_v35  ;;  %1181 = vmatpush.msrb.mxu2 %v350_v35 }
 0x3aa   :  { %1182 = vmatpush.msra.mxu3 %v350_v35 }
 0x3ab   :  { %1013 = vmatpush.msra.mxu1 %v1008_v36  ;;  %1054 = vmatpush.msra.mxu2 %v1049_v57  ;;  %v486_v36 = vld [vmem:[%s1802_s14] sm:$0xff] }
 0x3ad   :  { %1014 = vmatpush.msra.mxu1 %v1007_v37  ;;  %1055 = vmatpush.msra.mxu2 %v1048_v58  ;;  %v487_v37 = vmul.f32 %v486_v36, %v1652_v34  ;;  %v1086_v58 = vld [vmem:[#allocation13 + $0x58] sm:$0xff] }
 0x3af   :  { %1015 = vmatpush.msra.mxu1 %v1006_v38  ;;  %1056 = vmatpush.msra.mxu2 %v1047_v60  ;;  %v1479_v38 = vmov 1  }
 0x3b0   :  { %1209 = vset.pattern.permute.xlu1 %v1479_v38 }
 0x3b1   :  { %1016 = vmatpush.msra.mxu1 %v1005_v39  ;;  %1057 = vmatpush.msra.mxu2 %v1046_v61 }
 0x3b3   :  { %1017 = vmatpush.msra.mxu1 %v1004_v40  ;;  %1058 = vmatpush.msra.mxu2 %v1045_v62  ;;  %v1085_v62 = vld [vmem:[#allocation13 + $0x50] sm:$0xff] }
 0x3b5   :  { %1018 = vmatpush.msra.mxu1 %v1003_v41  ;;  %1059 = vmatpush.msra.mxu2 %v1044_v63 }
 0x3b7   :  { %1019 = vmatpush.msra.mxu1 %v1002_v42  ;;  %1060 = vmatpush.msra.mxu2 %v1043_v0 }
 0x3b9   :  { %1020 = vmatpush.msra.mxu1 %v1001_v43 }
 0x3bb   :  { %1021 = vmatpush.msra.mxu1 %v1000_v44 }
 0x3bd   :  { %1022 = vmatpush.msra.mxu1 %v999_v45 }
 0x3bf   :  { %1023 = vmatpush.msra.mxu1 %v998_v46  ;;  %v367_v48 = vpop.trf.xlu1 }
 0x3c0   :  { %1163 = vmatmul.msk.f32.vlgmr.msrb.gmra.mxu1 %vm311_vm2, %v367_v48  ;;  %v1090_v48 = vld [vmem:[#allocation13 + $0x78] sm:$0xff] }
 0x3c1   :  { %1024 = vmatpush.msra.mxu1 %v997_v47  ;;  %1095 = vmatpush.msrb.mxu0 %v1090_v48 }
 0x3c3   :  { %1025 = vmatpush.msra.mxu1 %v996_v49  ;;  %v1089_v49 = vld [vmem:[#allocation13 + $0x70] sm:$0xff] }
 0x3c4   :  { %1096 = vmatpush.msrb.mxu0 %v1089_v49 }
 0x3c5   :  { %1026 = vmatpush.msra.mxu1 %v995_v50 }
 0x3c7   :  { %v368_v53 = vpop.trf.xlu1  ;;  %1027 = vmatpush.msra.mxu1 %v994_v51 }
 0x3c8   :  { %1164 = vmatmul.msk.f32.gmra.mxu1 %vm311_vm2, %v368_v53 }
 0x3c9   :  { %1028 = vmatpush.msra.mxu1 %v993_v52  ;;  %v1088_v52 = vld [vmem:[#allocation13 + $0x68] sm:$0xff] }
 0x3ca   :  { %1097 = vmatpush.msrb.mxu0 %v1088_v52 }
 0x3cf   :  { %v369_v54 = vpop.trf.xlu1 }
 0x3d0   :  { %1165 = vmatmul.msk.f32.gmra.mxu1 %vm311_vm2, %v369_v54  ;;  %v1087_v54 = vld [vmem:[#allocation13 + $0x60] sm:$0xff] }
 0x3d1   :  { %1098 = vmatpush.msrb.mxu0 %v1087_v54 }
 0x3d3   :  { %1099 = vmatpush.msrb.mxu0 %v1086_v58 }
 0x3d5   :  { %1100 = vmatpush.msrb.mxu0 %v1085_v62  ;;  %v1235_v62 = vld [vmem:[%s1801_s13] ss:$0 sm:$0xff]  ;;  %s1486_s13 = smov [#allocation15]  }
 0x3d6   :  { %s1121_s4 = sshll.u32 %s1486_s13, 4  ;;  %s1122_s4 = int_to_ptr.vmem [resolvable:$true] %s1121_s4 }
 0x3d7   :  { %v370_v55 = vpop.trf.xlu1  ;;  %1126 = dma.vmem_to_hbm [thread:$0]  %s1122_s4, 128, %s1124_s12, [#allocation6]  }
 0x3d8   :  { %1166 = vmatmul.msk.f32.gmra.mxu1 %vm311_vm2, %v370_v55 }
 0x3df   :  { %v371_v3 = vpop.trf.xlu1 }
 0x3e0   :  { %1029 = vmatmul.f32.vlgmr.msra.gmra.mxu1 %v1631_v59  ;;  %v1042_v59 = vld [vmem:[#allocation12 + $0x40] sm:$0xff]  ;;  %1167 = vmatmul.msk.f32.vlgmr.msrb.gmra.mxu2 %vm311_vm2, %v371_v3  ;;  %v1084_v3 = vld [vmem:[#allocation13 + $0x48] sm:$0xff] }
 0x3e1   :  { %1061 = vmatpush.msra.mxu2 %v1042_v59  ;;  %1101 = vmatpush.msrb.mxu0 %v1084_v3 }
 0x3e3   :  { %1062 = vmatpush.msra.mxu2 %v1041_v4 }
 0x3e5   :  { %1063 = vmatpush.msra.mxu2 %v1040_v7  ;;  %v1083_v7 = vld [vmem:[#allocation13 + $0x40] sm:$0xff] }
 0x3e6   :  { %1102 = vmatpush.msrb.mxu0 %v1083_v7 }
 0x3e7   :  { %1064 = vmatpush.msra.mxu2 %v1039_v8  ;;  %v372_v1 = vpop.trf.xlu1 }
 0x3e8   :  { %1168 = vmatmul.msk.f32.gmra.mxu2 %vm311_vm2, %v372_v1  ;;  %v1079_v1 = vld [vmem:[#allocation13 + $0x20] sm:$0xff] }
 0x3e9   :  { %1065 = vmatpush.msra.mxu2 %v1038_v12  ;;  %v1080_v12 = vld [vmem:[#allocation13 + $0x28] sm:$0xff] }
 0x3eb   :  { %1066 = vmatpush.msra.mxu2 %v1037_v13 }
 0x3ed   :  { %1067 = vmatpush.msra.mxu2 %v1036_v14  ;;  %v1078_v14 = vld [vmem:[#allocation13 + $0x18] sm:$0xff] }
 0x3ef   :  { %1068 = vmatpush.msra.mxu2 %v1035_v6  ;;  %v373_v50 = vpop.trf.xlu1  ;;  %v1077_v6 = vld [vmem:[#allocation13 + $0x10] sm:$0xff] }
 0x3f0   :  { %1169 = vmatmul.msk.f32.vlgmr.msra.gmra.mxu3 %vm311_vm2, %v373_v50 }
 0x3f1   :  { %1069 = vmatpush.msra.mxu2 %v1034_v15  ;;  %v1076_v15 = vld [vmem:[#allocation13 + $0x8] sm:$0xff] }
 0x3f7   :  { %v374_v63 = vpop.trf.xlu1 }
 0x3f8   :  { %1170 = vmatmul.msk.f32.gmra.mxu3 %vm311_vm2, %v374_v63 }
 0x3ff   :  { %v375_v13 = vpop.trf.xlu1 }
 0x400   :  { %1171 = vmatmul.msk.f32.gmra.mxu3 %vm311_vm2, %v375_v13 }
 0x43d   :  { %v448_v10 = vpop.f32.mrf.mxu1 }
 0x43e   :  { %v485_v11 = vadd.f32 %v484_v9, %v448_v10  ;;  %v1082_v9 = vld [vmem:[#allocation13 + $0x38] sm:$0xff] }
 0x43f   :  { %1103 = vmatpush.msrb.mxu0 %v1082_v9 }
 0x440   :  { %1244 = vrcp.f32 %v485_v11  ;;  %569 = vperm.xlu2 %1205, %v485_v11   ;;  %v554_v20 = vand.u32 2147483648, %v485_v11  ;;  %v552_v22 = vand.u32 2147483647, %v485_v11  ;;  %vm548_vm12 = vweird.f32 %v485_v11 }
 0x442   :  { %v555_v25 = vor.u32 1.1754944e-38, %v554_v20  ;;  %vm553_vm14 = vcmp.eq.f32.partialorder %v552_v22, 8.507059e+37  ;;  %v1234_v20 = vld [vmem:[%s1799_s11] ss:$0 sm:$0xff] }
 0x445   :  { %v451_v16 = vpop.f32.mrf.mxu1 }
 0x446   :  { %v1245_v17 = vpop.eup %1244  ;;  %v1075_v16 = vld [vmem:[#allocation13] sm:$0xff] }
 0x447   :  { %v544_v18 = vmul.f32 %v1245_v17, %v485_v11  ;;  %vm549_vm11 = vweird.f32 %v1245_v17 }
 0x448   :  { %vm550_vm13 = vmor %vm548_vm12, %vm549_vm11 }
 0x449   :  { %v545_v19 = vsub.f32 1.0, %v544_v18 }
 0x44b   :  { %v546_v21 = vmul.f32 %v1245_v17, %v545_v19 }
 0x44d   :  { %v453_v23 = vpop.f32.mrf.mxu1  ;;  %v547_v24 = vadd.f32 %v1245_v17, %v546_v21 }
 0x44f   :  { %v551_v26 = vsel %vm550_vm13, %v1245_v17, %v547_v24  ;;  %v376_v17 = vpop.trf.xlu1 }
 0x450   :  { %v1668_v27 = vsel %vm553_vm14, %v555_v25, %v551_v26  ;;  %1172 = vmatmul.msk.f32.gmra.mxu3 %vm311_vm2, %v376_v17  ;;  %vm736_vm14 = vcmp.eq.s32.totalorder %v1641_v2, 3 }
 0x451   :  { %560 = vperm.xlu2 %1205, %v1668_v27   ;;  %v565_v28 = vperm.slane %v1668_v27, 0 }
 0x453   :  { %v566_v29 = vmul.f32 %v565_v28, %v485_v11 }
 0x455   :  { %579 = vperm.xlu0 %1206, %v566_v29   ;;  %v455_v30 = vpop.f32.mrf.mxu1 }
 0x456   :  { %v1480_v30 = vmov 2  }
 0x457   :  { %v377_v18 = vpop.trf.xlu1 }
 0x458   :  { %1173 = vmatmul.msk.f32.gmra.mxu3 %vm311_vm2, %v377_v18 }
 0x45d   :  { %v1030_v32 = vpop.f32.mrf.mxu1  ;;  %1208 = vset.pattern.permute.xlu0 %v1479_v38 }
 0x45e   :  { %v1031_v33 = vadd.f32 %v1233_v31, %v1030_v32 }
 0x45f   :  { %v378_v19 = vpop.trf.xlu1 }
 0x460   :  { %1246 = vtanh.f32 %v1031_v33  ;;  %1174 = vmatmul.msk.f32.gmra.mxu3 %vm311_vm2, %v378_v19 }
 0x463   :  { %v457_v42 = vpop.f32.mrf.mxu2 }
 0x466   :  { %v1247_v35 = vpop.eup %1246 }
 0x467   :  { %1070 = vmatmul.f32.vlgmr.msra.gmra.mxu2 %v1247_v35  ;;  %v379_v24 = vpop.trf.xlu1 }
 0x468   :  { %1175 = vmatmul.msk.f32.gmra.mxu3 %vm311_vm2, %v379_v24 }
 0x46b   :  { %v459_v45 = vpop.f32.mrf.mxu2 }
 0x46f   :  { %v380_v26 = vpop.trf.xlu1 }
 0x470   :  { %1176 = vmatmul.msk.f32.gmra.mxu3 %vm311_vm2, %v380_v26 }
 0x473   :  { %v461_v42 = vpop.f32.mrf.mxu3 }
 0x477   :  { %488 = vxpose.xlu2.b32.start.end [1/1] (short) (narrow) %v487_v37, 8  ;;  %v381_v28 = vpop.trf.xlu1 }
 0x478   :  { %1177 = vmatmul.msk.f32.gmra.mxu3 %vm311_vm2, %v381_v28 }
 0x47b   :  { %v463_v45 = vpop.f32.mrf.mxu3 }
 0x47f   :  { %v382_v29 = vpop.trf.xlu1 }
 0x480   :  { %1178 = vmatmul.msk.f32.gmra.mxu3 %vm311_vm2, %v382_v29 }
 0x49a   :  { %v570_v39 = vpop.permute.xlu2 %569 }
 0x4ab   :  { %v561_v40 = vpop.permute.xlu2 %560 }
 0x4ac   :  { %v1681_v41 = vmul.f32 %v561_v40, %v485_v11 }
 0x4ae   :  { %v572_v43 = vperm.slane %v1681_v41, 0 }
 0x4b0   :  { %v573_v44 = vmul.f32 %v572_v43, %v570_v39 }
 0x4b2   :  { %v574_v46 = vsub.f32 %v485_v11, %v573_v44  ;;  %v1081_v11 = vld [vmem:[#allocation13 + $0x30] sm:$0xff] }
 0x4b3   :  { %1104 = vmatpush.msrb.mxu0 %v1081_v11 }
 0x4b5   :  { %1105 = vmatpush.msrb.mxu0 %v1080_v12 }
 0x4b7   :  { %1106 = vmatpush.msrb.mxu0 %v1079_v1 }
 0x4b9   :  { %1107 = vmatpush.msrb.mxu0 %v1078_v14 }
 0x4bb   :  { %1108 = vmatpush.msrb.mxu0 %v1077_v6 }
 0x4bd   :  { %1109 = vmatpush.msrb.mxu0 %v1076_v15 }
 0x4bf   :  { %1110 = vmatpush.msrb.mxu0 %v1075_v16 }
 0x4c7   :  { %v580_v47 = vpop.permute.xlu0 %579 }
 0x4c8   :  { %v1687_v34 = vsel %vm564_vm15, %v580_v47, %v574_v46 }
 0x4c9   :  { %1248 = vrcp.f32 %v1687_v34  ;;  %623 = vperm.xlu0 %1208, %v1687_v34   ;;  %v608_v57 = vand.u32 2147483648, %v1687_v34  ;;  %v606_v61 = vand.u32 2147483647, %v1687_v34  ;;  %vm602_vm1 = vweird.f32 %v1687_v34 }
 0x4cb   :  { %v609_v59 = vor.u32 1.1754944e-38, %v608_v57  ;;  %vm607_vm4 = vcmp.eq.f32.partialorder %v606_v61, 8.507059e+37 }
 0x4cf   :  { %v1249_v51 = vpop.eup %1248 }
 0x4d0   :  { %v598_v53 = vmul.f32 %v1249_v51, %v1687_v34  ;;  %vm603_vm0 = vweird.f32 %v1249_v51 }
 0x4d1   :  { %vm604_vm3 = vmor %vm602_vm1, %vm603_vm0  ;;  %1210 = vset.pattern.permute.xlu0 %v1480_v30 }
 0x4d2   :  { %v599_v55 = vsub.f32 1.0, %v598_v53 }
 0x4d4   :  { %v600_v60 = vmul.f32 %v1249_v51, %v599_v55  ;;  %v465_v55 = vpop.f32.mrf.mxu3 }
 0x4d6   :  { %v601_v0 = vadd.f32 %v1249_v51, %v600_v60 }
 0x4d8   :  { %v605_v4 = vsel %vm604_vm3, %v1249_v51, %v601_v0 }
 0x4d9   :  { %v1697_v5 = vsel %vm607_vm4, %v609_v59, %v605_v4  ;;  %1207 = vset.pattern.permute.xlu2 %v1479_v38  ;;  %vm795_vm4 = vcmp.eq.s32.totalorder %v1641_v2, 4 }
 0x4da   :  { %v619_v8 = vperm.slane %v1697_v5, 1 }
 0x4dc   :  { %v620_v10 = vmul.f32 %v619_v8, %v1687_v34  ;;  %v467_v57 = vpop.f32.mrf.mxu3 }
 0x4de   :  { %633 = vperm.xlu1 %1209, %v620_v10  }
 0x4e0   :  { %614 = vperm.xlu2 %1207, %v1697_v5  }
 0x4e4   :  { %v469_v58 = vpop.f32.mrf.mxu3 }
 0x4ea   :  { %v1071_v21 = vpop.f32.mrf.mxu2 }
 0x4eb   :  { %v1072_v22 = vadd.f32 %v1234_v20, %v1071_v21 }
 0x4ec   :  { %v471_v60 = vpop.f32.mrf.mxu3 }
 0x4ed   :  { %1250 = vtanh.f32 %v1072_v22 }
 0x4f3   :  { %v1251_v25 = vpop.eup %1250 }
 0x4f4   :  { %v473_v63 = vpop.f32.mrf.mxu3 }
 0x4fc   :  { %v475_v4 = vpop.f32.mrf.mxu3 }
 0x510   :  { %v504_v23 = vpop.trf.xlu2 }
 0x511   :  { %1180 = vmatmul.msk.f32.vlgmr.msra.gmra.mxu0 %vm311_vm2, %v504_v23  ;;  %v637_v23 = vrot.slane %v1697_v5, 1 }
 0x519   :  { %1111 = vmatmul.f32.vlgmr.msrb.gmra.mxu0 %v1251_v25 }
 0x53a   :  { %v615_v31 = vpop.permute.xlu2 %614 }
 0x53b   :  { %v1717_v32 = vmul.f32 %v615_v31, %v1687_v34  ;;  %v624_v35 = vpop.permute.xlu0 %623  ;;  %v1481_v31 = vmov 3  }
 0x53d   :  { %v626_v33 = vperm.slane %v1717_v32, 1  ;;  %v646_v5 = vrot.slane %v1717_v32, 1 }
 0x53f   :  { %v627_v36 = vmul.f32 %v626_v33, %v624_v35 }
 0x541   :  { %v628_v37 = vsub.f32 %v1687_v34, %v627_v36 }
 0x550   :  { %v634_v39 = vpop.permute.xlu1 %633 }
 0x551   :  { %v636_v40 = vsel %vm618_vm5, %v634_v39, %v628_v37 }
 0x552   :  { %1252 = vrcp.f32 %v636_v40  ;;  %682 = vperm.xlu0 %1210, %v636_v40   ;;  %v667_v47 = vand.u32 2147483648, %v636_v40  ;;  %v665_v49 = vand.u32 2147483647, %v636_v40  ;;  %vm661_vm6 = vweird.f32 %v636_v40 }
 0x554   :  { %v668_v51 = vor.u32 1.1754944e-38, %v667_v47  ;;  %vm666_vm8 = vcmp.eq.f32.partialorder %v665_v49, 8.507059e+37 }
 0x558   :  { %v1253_v43 = vpop.eup %1252 }
 0x559   :  { %v657_v44 = vmul.f32 %v1253_v43, %v636_v40  ;;  %vm662_vm2 = vweird.f32 %v1253_v43 }
 0x55a   :  { %vm663_vm7 = vmor %vm661_vm6, %vm662_vm2 }
 0x55b   :  { %v658_v46 = vsub.f32 1.0, %v657_v44 }
 0x55d   :  { %v659_v48 = vmul.f32 %v1253_v43, %v658_v46  ;;  %v1482_v46 = vmov 4  }
 0x55f   :  { %v660_v50 = vadd.f32 %v1253_v43, %v659_v48 }
 0x561   :  { %v664_v34 = vsel %vm663_vm7, %v1253_v43, %v660_v50 }
 0x562   :  { %v1724_v52 = vsel %vm666_vm8, %v668_v51, %v664_v34  ;;  %vm854_vm8 = vcmp.eq.s32.totalorder %v1641_v2, 5 }
 0x563   :  { %673 = vperm.xlu0 %1210, %v1724_v52   ;;  %v678_v53 = vperm.slane %v1724_v52, 2  ;;  %v696_v39 = vrot.slane %v1724_v52, 2 }
 0x565   :  { %v679_v54 = vmul.f32 %v678_v53, %v636_v40 }
 0x56b   :  { %692 = vperm.xlu0 %1210, %v679_v54  }
 0x573   :  { %1211 = vset.pattern.permute.xlu0 %v1478_v56  ;;  %v477_v56 = vpop.f32.mrf.mxu3 }
 0x57b   :  { %v479_v7 = vpop.f32.mrf.mxu3 }
 0x58e   :  { %v540_v61 = vpop.f32.mrf.mxu0 }
 0x58f   :  { %586 = vperm.xlu0 %1211, %v540_v61   ;;  %v583_v0 = vmul.f32 %v1668_v27, %v540_v61 }
 0x596   :  { %v1112_v59 = vpop.f32.mrf.mxu0 }
 0x597   :  { %v1113_v3 = vadd.f32 %v1235_v62, %v1112_v59  ;;  %593 = vperm.xlu0 %1211, %v583_v0  }
 0x599   :  { %1115 = vst [vmem:[#allocation16] sm:$0xff] %v1113_v3 }
 0x59a   :  { %1137 = dma.vmem_to_hbm [thread:$0]  %s1133_s22, 128, %s1135_s28, [#allocation17]  }
 0x59f   :  { %1212 = vset.pattern.permute.xlu0 %v1479_v38 }
 0x5c4   :  { %v683_v8 = vpop.permute.xlu0 %682 }
 0x5d5   :  { %v674_v9 = vpop.permute.xlu0 %673 }
 0x5d6   :  { %v1734_v10 = vmul.f32 %v674_v9, %v636_v40 }
 0x5d8   :  { %v685_v11 = vperm.slane %v1734_v10, 2  ;;  %v705_v0 = vrot.slane %v1734_v10, 2 }
 0x5da   :  { %v686_v12 = vmul.f32 %v685_v11, %v683_v8 }
 0x5dc   :  { %v687_v1 = vsub.f32 %v636_v40, %v686_v12 }
 0x5dd   :  { %v693_v27 = vpop.permute.xlu0 %692 }
 0x5de   :  { %v695_v13 = vsel %vm677_vm9, %v693_v27, %v687_v1  ;;  %v1483_v27 = vmov 5  }
 0x5df   :  { %1254 = vrcp.f32 %v695_v13  ;;  %v726_v19 = vand.u32 2147483648, %v695_v13  ;;  %vm720_vm11 = vweird.f32 %v695_v13  ;;  %v724_v21 = vand.u32 2147483647, %v695_v13 }
 0x5e1   :  { %v727_v28 = vor.u32 1.1754944e-38, %v726_v19  ;;  %vm725_vm13 = vcmp.eq.f32.partialorder %v724_v21, 8.507059e+37 }
 0x5e5   :  { %v1255_v14 = vpop.eup %1254 }
 0x5e6   :  { %v716_v6 = vmul.f32 %v1255_v14, %v695_v13  ;;  %vm721_vm10 = vweird.f32 %v1255_v14 }
 0x5e7   :  { %vm722_vm12 = vmor %vm720_vm11, %vm721_vm10 }
 0x5e8   :  { %v717_v38 = vsub.f32 1.0, %v716_v6 }
 0x5ea   :  { %v718_v16 = vmul.f32 %v1255_v14, %v717_v38 }
 0x5ec   :  { %v719_v18 = vadd.f32 %v1255_v14, %v718_v16 }
 0x5ee   :  { %v723_v25 = vsel %vm722_vm12, %v1255_v14, %v719_v18 }
 0x601   :  { %v587_v15 = vpop.permute.xlu0 %586 }
 0x602   :  { %v589_v17 = vmul.f32 %v587_v15, %v1681_v41  ;;  %v1744_v41 = vsel %vm725_vm13, %v727_v28, %v723_v25  ;;  %vm913_vm13 = vcmp.eq.s32.totalorder %v1641_v2, 6 }
 0x603   :  { %v737_v29 = vperm.slane %v1744_v41, 3  ;;  %v755_v7 = vrot.slane %v1744_v41, 3 }
 0x604   :  { %v590_v20 = vsub.f32 %v540_v61, %v589_v17 }
 0x605   :  { %v738_v33 = vmul.f32 %v737_v29, %v695_v13 }
 0x609   :  { %v594_v22 = vpop.permute.xlu0 %593 }
 0x60a   :  { %v596_v24 = vsel %vm564_vm15, %v594_v22, %v590_v20 }
 0x60b   :  { %642 = vperm.xlu0 %1212, %v596_v24   ;;  %v639_v26 = vmul.f32 %v637_v23, %v596_v24 }
 0x60d   :  { %652 = vperm.xlu2 %1207, %v639_v26  }
 0x613   :  { %1213 = vset.pattern.permute.xlu0 %v1481_v31 }
 0x614   :  { %732 = vperm.xlu0 %1213, %v1744_v41  }
 0x615   :  { %1214 = vset.pattern.permute.xlu2 %v1481_v31 }
 0x616   :  { %751 = vperm.xlu2 %1214, %v738_v33  }
 0x61c   :  { %741 = vperm.xlu0 %1213, %v695_v13  }
 0x61e   :  { %1216 = vset.pattern.permute.xlu2 %v1480_v30 }
 0x624   :  { %1215 = vset.pattern.permute.xlu0 %v1480_v30 }
 0x667   :  { %v653_v40 = vpop.permute.xlu2 %652 }
 0x670   :  { %v752_v49 = vpop.permute.xlu2 %751 }
 0x67d   :  { %v643_v35 = vpop.permute.xlu0 %642 }
 0x67e   :  { %v648_v36 = vmul.f32 %v646_v5, %v643_v35 }
 0x680   :  { %v649_v37 = vsub.f32 %v596_v24, %v648_v36 }
 0x682   :  { %v655_v42 = vsel %vm618_vm5, %v653_v40, %v649_v37 }
 0x683   :  { %701 = vperm.xlu0 %1215, %v655_v42   ;;  %v698_v43 = vmul.f32 %v696_v39, %v655_v42 }
 0x685   :  { %711 = vperm.xlu2 %1216, %v698_v43  }
 0x686   :  { %v733_v44 = vpop.permute.xlu0 %732 }
 0x687   :  { %v735_v45 = vmul.f32 %v733_v44, %v695_v13 }
 0x689   :  { %v744_v47 = vperm.slane %v735_v45, 3  ;;  %v764_v16 = vrot.slane %v735_v45, 3 }
 0x68b   :  { %1217 = vset.pattern.permute.xlu0 %v1482_v46 }
 0x68d   :  { %1218 = vset.pattern.permute.xlu2 %v1482_v46 }
 0x68e   :  { %v742_v30 = vpop.permute.xlu0 %741 }
 0x68f   :  { %v745_v32 = vmul.f32 %v744_v47, %v742_v30 }
 0x691   :  { %v746_v48 = vsub.f32 %v695_v13, %v745_v32  ;;  %v1484_v32 = vmov 6  }
 0x693   :  { %v754_v50 = vsel %vm736_vm14, %v752_v49, %v746_v48 }
 0x694   :  { %1256 = vrcp.f32 %v754_v50  ;;  %800 = vperm.xlu0 %1217, %v754_v50   ;;  %v785_v53 = vand.u32 2147483648, %v754_v50  ;;  %v783_v55 = vand.u32 2147483647, %v754_v50  ;;  %vm779_vm0 = vweird.f32 %v754_v50 }
 0x696   :  { %v786_v58 = vor.u32 1.1754944e-38, %v785_v53  ;;  %vm784_vm3 = vcmp.eq.f32.partialorder %v783_v55, 8.507059e+37 }
 0x69a   :  { %v1257_v51 = vpop.eup %1256 }
 0x69b   :  { %v775_v34 = vmul.f32 %v1257_v51, %v754_v50  ;;  %vm780_vm15 = vweird.f32 %v1257_v51 }
 0x69c   :  { %1220 = vset.pattern.permute.xlu0 %v1481_v31  ;;  %vm781_vm1 = vmor %vm779_vm0, %vm780_vm15 }
 0x69d   :  { %v776_v52 = vsub.f32 1.0, %v775_v34 }
 0x69f   :  { %v777_v54 = vmul.f32 %v1257_v51, %v776_v52 }
 0x6a1   :  { %v778_v57 = vadd.f32 %v1257_v51, %v777_v54 }
 0x6a3   :  { %v782_v60 = vsel %vm781_vm1, %v1257_v51, %v778_v57 }
 0x6a4   :  { %v787_v61 = vsel %vm784_vm3, %v786_v58, %v782_v60  ;;  %vm972_vm3 = vcmp.eq.s32.totalorder %v1641_v2, 7 }
 0x6a5   :  { %791 = vperm.xlu2 %1218, %v787_v61   ;;  %v796_v62 = vperm.slane %v787_v61, 4  ;;  %v814_v24 = vrot.slane %v787_v61, 4 }
 0x6a7   :  { %v797_v63 = vmul.f32 %v796_v62, %v754_v50 }
 0x6ad   :  { %810 = vperm.xlu2 %1218, %v797_v63  }
 0x6b5   :  { %1219 = vset.pattern.permute.xlu2 %v1481_v31 }
 0x6df   :  { %v712_v4 = vpop.permute.xlu2 %711 }
 0x6f5   :  { %v702_v59 = vpop.permute.xlu0 %701 }
 0x6f6   :  { %v707_v3 = vmul.f32 %v705_v0, %v702_v59 }
 0x6f8   :  { %v708_v56 = vsub.f32 %v655_v42, %v707_v3 }
 0x6fa   :  { %v714_v8 = vsel %vm677_vm9, %v712_v4, %v708_v56 }
 0x6fb   :  { %760 = vperm.xlu2 %1219, %v714_v8   ;;  %v757_v9 = vmul.f32 %v755_v7, %v714_v8 }
 0x6fd   :  { %770 = vperm.xlu0 %1220, %v757_v9  }
 0x6ff   :  { %v792_v11 = vpop.permute.xlu2 %791 }
 0x700   :  { %v794_v12 = vmul.f32 %v792_v11, %v754_v50 }
 0x702   :  { %v803_v1 = vperm.slane %v794_v12, 4  ;;  %v823_v39 = vrot.slane %v794_v12, 4 }
 0x703   :  { %1221 = vset.pattern.permute.xlu2 %v1482_v46 }
 0x705   :  { %1222 = vset.pattern.permute.xlu0 %v1483_v27 }
 0x706   :  { %v801_v13 = vpop.permute.xlu0 %800 }
 0x707   :  { %v804_v10 = vmul.f32 %v803_v1, %v801_v13  ;;  %v811_v6 = vpop.permute.xlu2 %810 }
 0x709   :  { %v805_v14 = vsub.f32 %v754_v50, %v804_v10 }
 0x70b   :  { %v813_v38 = vsel %vm795_vm4, %v811_v6, %v805_v14 }
 0x70c   :  { %859 = vperm.xlu0 %1222, %v813_v38   ;;  %1258 = vrcp.f32 %v813_v38  ;;  %v844_v41 = vand.u32 2147483648, %v813_v38  ;;  %vm838_vm2 = vweird.f32 %v813_v38  ;;  %v842_v29 = vand.u32 2147483647, %v813_v38 }
 0x70e   :  { %v845_v33 = vor.u32 1.1754944e-38, %v844_v41  ;;  %vm843_vm7 = vcmp.eq.f32.partialorder %v842_v29, 8.507059e+37 }
 0x712   :  { %v1259_v18 = vpop.eup %1258 }
 0x713   :  { %v834_v20 = vmul.f32 %v1259_v18, %v813_v38  ;;  %vm839_vm5 = vweird.f32 %v1259_v18 }
 0x714   :  { %vm840_vm6 = vmor %vm838_vm2, %vm839_vm5 }
 0x715   :  { %v835_v23 = vsub.f32 1.0, %v834_v20 }
 0x717   :  { %v836_v25 = vmul.f32 %v1259_v18, %v835_v23 }
 0x719   :  { %v837_v28 = vadd.f32 %v1259_v18, %v836_v25 }
 0x71b   :  { %v841_v31 = vsel %vm840_vm6, %v1259_v18, %v837_v28 }
 0x71c   :  { %v846_v5 = vsel %vm843_vm7, %v845_v33, %v841_v31 }
 0x71d   :  { %v855_v35 = vperm.slane %v846_v5, 5  ;;  %v873_v43 = vrot.slane %v846_v5, 5 }
 0x71f   :  { %v856_v36 = vmul.f32 %v855_v35, %v813_v38 }
 0x755   :  { %v761_v15 = vpop.permute.xlu2 %760 }
 0x756   :  { %v766_v17 = vmul.f32 %v764_v16, %v761_v15 }
 0x758   :  { %v767_v19 = vsub.f32 %v714_v8, %v766_v17 }
 0x76f   :  { %v771_v21 = vpop.permute.xlu0 %770 }
 0x770   :  { %v773_v22 = vsel %vm736_vm14, %v771_v21, %v767_v19 }
 0x771   :  { %819 = vperm.xlu2 %1221, %v773_v22   ;;  %v816_v26 = vmul.f32 %v814_v24, %v773_v22 }
 0x779   :  { %829 = vperm.xlu2 %1221, %v816_v26  }
 0x77e   :  { %v860_v49 = vpop.permute.xlu0 %859 }
 0x781   :  { %1223 = vset.pattern.permute.xlu2 %v1483_v27  ;;  %v1485_v27 = vmov 7  }
 0x782   :  { %850 = vperm.xlu2 %1223, %v846_v5   ;;  %1228 = vset.pattern.permute.xlu1 %v1485_v27 }
 0x78a   :  { %869 = vperm.xlu2 %1223, %v856_v36  }
 0x7cb   :  { %v820_v37 = vpop.permute.xlu2 %819 }
 0x7cc   :  { %v825_v40 = vmul.f32 %v823_v39, %v820_v37 }
 0x7ce   :  { %v826_v42 = vsub.f32 %v773_v22, %v825_v40 }
 0x7d3   :  { %v830_v44 = vpop.permute.xlu2 %829 }
 0x7d4   :  { %v832_v45 = vsel %vm795_vm4, %v830_v44, %v826_v42 }
 0x7d5   :  { %878 = vperm.xlu0 %1222, %v832_v45   ;;  %v875_v46 = vmul.f32 %v873_v43, %v832_v45 }
 0x7d7   :  { %888 = vperm.xlu2 %1223, %v875_v46  }
 0x7dc   :  { %v851_v47 = vpop.permute.xlu2 %850 }
 0x7dd   :  { %v853_v30 = vmul.f32 %v851_v47, %v813_v38  ;;  %1224 = vset.pattern.permute.xlu0 %v1484_v32 }
 0x7df   :  { %v862_v48 = vperm.slane %v853_v30, 5  ;;  %1225 = vset.pattern.permute.xlu2 %v1484_v32  ;;  %v882_v4 = vrot.slane %v853_v30, 5 }
 0x7e1   :  { %v863_v50 = vmul.f32 %v862_v48, %v860_v49 }
 0x7e3   :  { %v864_v51 = vsub.f32 %v813_v38, %v863_v50 }
 0x7e4   :  { %v870_v34 = vpop.permute.xlu2 %869 }
 0x7e5   :  { %v872_v52 = vsel %vm854_vm8, %v870_v34, %v864_v51 }
 0x7e6   :  { %1260 = vrcp.f32 %v872_v52  ;;  %918 = vperm.xlu2 %1225, %v872_v52   ;;  %v903_v57 = vand.u32 2147483648, %v872_v52  ;;  %v901_v60 = vand.u32 2147483647, %v872_v52  ;;  %vm897_vm10 = vweird.f32 %v872_v52 }
 0x7e8   :  { %v904_v62 = vor.u32 1.1754944e-38, %v903_v57  ;;  %vm902_vm12 = vcmp.eq.f32.partialorder %v901_v60, 8.507059e+37 }
 0x7ec   :  { %v1261_v53 = vpop.eup %1260 }
 0x7ed   :  { %v893_v54 = vmul.f32 %v1261_v53, %v872_v52  ;;  %vm898_vm9 = vweird.f32 %v1261_v53 }
 0x7ee   :  { %vm899_vm11 = vmor %vm897_vm10, %vm898_vm9 }
 0x7ef   :  { %v894_v55 = vsub.f32 1.0, %v893_v54 }
 0x7f1   :  { %v895_v58 = vmul.f32 %v1261_v53, %v894_v55 }
 0x7f3   :  { %v896_v61 = vadd.f32 %v1261_v53, %v895_v58 }
 0x7f5   :  { %v900_v63 = vsel %vm899_vm11, %v1261_v53, %v896_v61 }
 0x7f6   :  { %v905_v0 = vsel %vm902_vm12, %v904_v62, %v900_v63 }
 0x7f7   :  { %909 = vperm.xlu0 %1224, %v905_v0   ;;  %v914_v59 = vperm.slane %v905_v0, 6  ;;  %v932_v9 = vrot.slane %v905_v0, 6 }
 0x7f9   :  { %v915_v3 = vmul.f32 %v914_v59, %v872_v52 }
 0x7fb   :  { %928 = vperm.xlu2 %1225, %v915_v3  }
 0x831   :  { %v889_v11 = vpop.permute.xlu2 %888 }
 0x840   :  { %v919_v13 = vpop.permute.xlu2 %918 }
 0x847   :  { %v879_v56 = vpop.permute.xlu0 %878 }
 0x848   :  { %v884_v7 = vmul.f32 %v882_v4, %v879_v56 }
 0x84a   :  { %v885_v8 = vsub.f32 %v832_v45, %v884_v7 }
 0x84c   :  { %v891_v12 = vsel %vm854_vm8, %v889_v11, %v885_v8 }
 0x84d   :  { %937 = vperm.xlu0 %1224, %v891_v12   ;;  %v934_v1 = vmul.f32 %v932_v9, %v891_v12 }
 0x84f   :  { %947 = vperm.xlu2 %1225, %v934_v1  }
 0x855   :  { %1226 = vset.pattern.permute.xlu0 %v1485_v27  ;;  %v929_v16 = vpop.permute.xlu2 %928 }
 0x857   :  { %1227 = vset.pattern.permute.xlu2 %v1485_v27 }
 0x869   :  { %v910_v10 = vpop.permute.xlu0 %909 }
 0x86a   :  { %v912_v14 = vmul.f32 %v910_v10, %v872_v52 }
 0x86c   :  { %v921_v6 = vperm.slane %v912_v14, 6  ;;  %v941_v41 = vrot.slane %v912_v14, 6 }
 0x86e   :  { %v922_v38 = vmul.f32 %v921_v6, %v919_v13 }
 0x870   :  { %v923_v15 = vsub.f32 %v872_v52, %v922_v38 }
 0x872   :  { %v931_v17 = vsel %vm913_vm13, %v929_v16, %v923_v15 }
 0x873   :  { %1262 = vrcp.f32 %v931_v17  ;;  %v962_v21 = vand.u32 2147483648, %v931_v17  ;;  %v960_v23 = vand.u32 2147483647, %v931_v17  ;;  %vm956_vm15 = vweird.f32 %v931_v17 }
 0x875   :  { %v963_v25 = vor.u32 1.1754944e-38, %v962_v21  ;;  %vm961_vm1 = vcmp.eq.f32.partialorder %v960_v23, 8.507059e+37 }
 0x879   :  { %v1263_v18 = vpop.eup %1262 }
 0x87a   :  { %v952_v19 = vmul.f32 %v1263_v18, %v931_v17  ;;  %vm957_vm14 = vweird.f32 %v1263_v18 }
 0x87b   :  { %vm958_vm0 = vmor %vm956_vm15, %vm957_vm14 }
 0x87c   :  { %v953_v20 = vsub.f32 1.0, %v952_v19 }
 0x87e   :  { %v954_v22 = vmul.f32 %v1263_v18, %v953_v20 }
 0x880   :  { %v955_v24 = vadd.f32 %v1263_v18, %v954_v22 }
 0x882   :  { %v959_v26 = vsel %vm958_vm0, %v1263_v18, %v955_v24 }
 0x883   :  { %v964_v28 = vsel %vm961_vm1, %v963_v25, %v959_v26 }
 0x884   :  { %968 = vperm.xlu0 %1226, %v964_v28   ;;  %v973_v5 = vrot.slane %v964_v28, 7 }
 0x8a9   :  { %v948_v35 = vpop.permute.xlu2 %947 }
 0x8bf   :  { %v938_v29 = vpop.permute.xlu0 %937 }
 0x8c0   :  { %v943_v31 = vmul.f32 %v941_v41, %v938_v29 }
 0x8c2   :  { %v944_v33 = vsub.f32 %v891_v12, %v943_v31 }
 0x8c4   :  { %v950_v36 = vsel %vm913_vm13, %v948_v35, %v944_v33 }
 0x8c5   :  { %978 = vperm.xlu2 %1227, %v950_v36   ;;  %v975_v37 = vmul.f32 %v973_v5, %v950_v36 }
 0x8c7   :  { %988 = vperm.xlu1 %1228, %v975_v37  }
 0x8f6   :  { %v969_v39 = vpop.permute.xlu0 %968 }
 0x8f7   :  { %v971_v40 = vmul.f32 %v969_v39, %v931_v17 }
 0x8f9   :  { %v982_v43 = vrot.slane %v971_v40, 7 }
 0x91f   :  { %v979_v42 = vpop.permute.xlu2 %978 }
 0x920   :  { %v984_v44 = vmul.f32 %v982_v43, %v979_v42 }
 0x922   :  { %v985_v45 = vsub.f32 %v950_v36, %v984_v44 }
 0x939   :  { %v989_v46 = vpop.permute.xlu1 %988 }
 0x93a   :  { %v991_v47 = vsel %vm972_vm3, %v989_v46, %v985_v45 }
 0x93b   :  { %992 = vst [vmem:[%s1806_s18] sm:$0x1] %v991_v47 }
 0x93c   :  { %1464 = dma.done.wait [#allocation6], 128  }
 0x93d   :  { %1465 = vsyncadd [#allocation6], 4294967168 }
 0x93e   :  { %1466 = dma.done.wait [#allocation17], 128  }
 0x93f   :  { %1467 = vsyncadd [#allocation17], 4294967168 }
 0x940   :  { %1154 = vsyncpa [#allocation5], 1 }
 0x941   :  { %1155 = vsyncpa [#allocation8], 1 }
 0x942   :  { %1156 = vsyncpa [#allocation11], 1 }
 0x943   :  { %1157 = vsyncpa [#allocation14], 1 }
 0x944   :  { %1158 = vsyncpa [#allocation6], 1 }
 0x945   :  { %1159 = vsyncpa [#allocation17], 1 }

</bundles_post_ra>
